<compile_context>
chip_gen: v6e
topology: v6e:2x2x1
jax: 0.10.0
libtpu: 0.0.40
codegen_flags: <defaults>
</compile_context>

<pallas_src>
import jax
import jax.numpy as jnp
from jax.experimental import pallas as pl
from jax.experimental.pallas import tpu as pltpu


# ----------------------------------------------------------------------------
# Fused Pallas kernel
# ----------------------------------------------------------------------------
def _build_fused_kernel(*, batch, num_layers, act_depth, num_final,
                        node_counts, inside_dims):
    B = batch
    L = num_layers
    H1, H2 = inside_dims
    n_perm = len(node_counts)
    f32 = jnp.float32

    def kernel(*refs):
        # ---- unpack refs (static layout, mirrors weight_and_act_meta_forward) ----
        idx = 0
        x_ref = refs[idx]; idx += 1                               # (L, B, num_dims)
        act_w = []
        for _ in range(act_depth):                                # (L,d_in,d_out),(L,1,d_out)
            act_w.append((refs[idx], refs[idx + 1])); idx += 2
        w_refs = list(refs[idx: idx + n_perm]); idx += n_perm     # (B, N_i, d_i+1)
        perm_p = []
        for i in range(n_perm):
            if i == 0:
                perm_p.append((refs[idx], None,
                               refs[idx + 1], refs[idx + 2], refs[idx + 3]))
                idx += 4
            else:
                perm_p.append(tuple(refs[idx: idx + 5]))          # (w1a,w1b,b1,w2,b2)
                idx += 5
        comb_w_ref, comb_b_ref = refs[idx], refs[idx + 1]; idx += 2
        out_ref = refs[idx]

        comb_w = comb_w_ref[...]                                  # (comb_in, 1), read once
        # out = comb_bias + sum_block block @ comb_w[rows]  (no concatenation of latents)
        acc = jnp.broadcast_to(comb_b_ref[...], (B, 1)).astype(f32)
        off = 0

        # ---- activation branch (AffinityMetaClassifier, only_latent) ----
        for l in range(L):
            h = x_ref[l]                                          # (B, num_dims)
            for li, (w_r, b_r) in enumerate(act_w):
                h = jnp.dot(h, w_r[l], preferred_element_type=f32) + b_r[l]
                if li < act_depth - 1:                            # ReLU on all but last
                    h = jnp.maximum(h, 0.0)
            acc = acc + jnp.dot(h, comb_w[off:off + num_final, :],
                                preferred_element_type=f32)
            off += num_final

        # ---- weights branch (PermInvModel, only_latent, inside_dims=(H1,H2)) ----
        prev = [None] * B                                         # per-row carry (N_prev, H2)
        for i in range(n_perm):
            w1a_r, w1b_r, b1_r, w2_r, b2_r = perm_p[i]
            w1a = w1a_r[...]                                      # (d_i+1, H1)
            b1 = b1_r[...]                                        # (1, H1)
            w2 = w2_r[...]                                        # (H1, H2)
            b2 = b2_r[...]                                        # (1, H2)
            reps, new_prev = [], []
            for bi in range(B):
                param_b = w_refs[i][bi]                           # (N_i, d_i+1)
                h1 = jnp.dot(param_b, w1a, preferred_element_type=f32) + b1
                if i > 0:
                    # Split-matmul carry: prev is identical for every node, so its
                    # contribution is a single (1, H1) row per batch element,
                    # computed from per-prev-node chunks of W1 (keeps everything
                    # 2-D / reshape-free inside the kernel).
                    pc = jnp.zeros((1, H1), f32)
                    for n in range(node_counts[i - 1]):
                        pc = pc + jnp.dot(prev[bi][n:n + 1, :], w1b_r[n],
                                          preferred_element_type=f32)
                    h1 = h1 + pc
                h1 = jnp.maximum(h1, 0.0)
                h2 = jnp.maximum(jnp.dot(h1, w2, preferred_element_type=f32) + b2,
                                 0.0)                             # (N_i, H2)
                # TODO(synk): trailing nn.Dropout of each mini-net is eval-mode identity.
                reps.append(jnp.sum(h2, axis=0, keepdims=True))   # node-sum -> (1, H2)
                new_prev.append(h2)                               # carried reps
            prev = new_prev
            rep = jnp.concatenate(reps, axis=0)                   # (B, H2)
            acc = acc + jnp.dot(rep, comb_w[off:off + H2, :],
                                preferred_element_type=f32)
            off += H2

        out_ref[...] = acc.astype(out_ref.dtype)

    return kernel


# ----------------------------------------------------------------------------
# Parameter construction (deterministic, synthetic) — PyTorch-equivalent layout
# ----------------------------------------------------------------------------
def _linear_params(key, d_in, d_out, scale=0.1):
    kw, kb = jax.random.split(key)
    w = scale * jax.random.normal(kw, (d_in, d_out), jnp.float32)
    b = scale * jax.random.normal(kb, (1, d_out), jnp.float32)
    return w, b


def init_params(key, *, num_dims, num_layers, inner_dims, num_final,
                dims, perm_inside_dims):
    state = {"key": key}

    def nk():
        state["key"], sub = jax.random.split(state["key"])
        return sub

    params = {"act": [], "perm": []}

    # AffinityMetaClassifier small models (one per layer, not shared).
    for _ in range(num_layers):
        sizes = [num_dims] + list(inner_dims) + [num_final]
        params["act"].append(
            [_linear_params(nk(), a, b) for a, b in zip(sizes[:-1], sizes[1:])])

    # PermInvModel mini-networks (input = fan_in + 1 bias + prev-layer reps).
    for i, d in enumerate(dims):
        prev = perm_inside_dims[-1] * d if i > 0 else 0
        sizes = [d + 1 + prev] + list(perm_inside_dims)
        params["perm"].append(
            [_linear_params(nk(), a, b) for a, b in zip(sizes[:-1], sizes[1:])])

    # Combination layer: Linear(final_act_size -> 1).
    comb_in = num_final * num_layers + perm_inside_dims[-1] * len(dims)
    params["comb"] = _linear_params(nk(), comb_in, 1)
    return params


def pack_params(params, *, dims, node_counts, perm_inside_dims):
    """One-time XLA-side restructuring so the fused kernel needs zero glue ops:
    stack the identically-shaped act-MLP weights over target layers, and split the
    first PermInv linear of each layer into its param part and per-prev-node carry
    chunks (row block n of W1[d+1:] corresponds to prev node n, matching the
    row-major .view flatten of the carried reps)."""
    assert len(perm_inside_dims) == 2, "kernel assumes PermInv inside_dims of length 2"
    H1, H2 = perm_inside_dims
    act_depth = len(params["act"][0])
    num_layers = len(params["act"])

    act = []
    for li in range(act_depth):
        w = jnp.stack([params["act"][l][li][0] for l in range(num_layers)])
        b = jnp.stack([params["act"][l][li][1] for l in range(num_layers)])
        act.append((w, b))

    perm = []
    for i in range(len(dims)):
        (w1, b1), (w2, b2) = params["perm"][i]
        d_in = dims[i] + 1
        w1a = w1[:d_in, :]
        if i > 0:
            n_prev = node_counts[i - 1]
            w1b = w1[d_in:, :].reshape(n_prev, H2, H1)
        else:
            w1b = None
        perm.append((w1a, w1b, b1, w2, b2))

    return {"act": act, "perm": perm, "comb": params["comb"]}


# ----------------------------------------------------------------------------
# Forward pass: single fused pallas_call
# ----------------------------------------------------------------------------
def weight_and_act_meta_forward(packed, w_list, x, *, num_final, node_counts,
                                perm_inside_dims):
    L, B, _ = x.shape
    act_depth = len(packed["act"])
    H1, H2 = perm_inside_dims

    inputs = [x]
    for w, b in packed["act"]:
        inputs += [w, b]
    inputs += list(w_list)
    for (w1a, w1b, b1, w2, b2) in packed["perm"]:
        inputs += [w1a, b1, w2, b2] if w1b is None else [w1a, w1b, b1, w2, b2]
    comb_w, comb_b = packed["comb"]
    inputs += [comb_w, comb_b]

    kernel = _build_fused_kernel(
        batch=B, num_layers=L, act_depth=act_depth, num_final=num_final,
        node_counts=tuple(node_counts), inside_dims=tuple(perm_inside_dims))

    # Advisory cost estimate: tells XLA this custom call is tiny so it does not
    # over-serialize surrounding ops around it.
    flops = 0
    for w, _ in packed["act"]:
        flops += 2 * B * int(w.shape[0]) * int(w.shape[1]) * int(w.shape[2])
    for i, (w1a, w1b, _, _, _) in enumerate(packed["perm"]):
        n_i = node_counts[i]
        flops += 2 * B * n_i * (int(w1a.shape[0]) * H1 + H1 * H2)
        if w1b is not None:
            flops += 2 * B * node_counts[i - 1] * H2 * H1
    flops += 2 * B * int(comb_w.shape[0])
    bytes_accessed = sum(int(a.size) * a.dtype.itemsize for a in inputs) + B * 4

    return pl.pallas_call(
        kernel,
        out_shape=jax.ShapeDtypeStruct((B, 1), jnp.float32),
        in_specs=[pl.BlockSpec(memory_space=pltpu.MemorySpace.VMEM)] * len(inputs),
        out_specs=pl.BlockSpec(memory_space=pltpu.MemorySpace.VMEM),
        cost_estimate=pl.CostEstimate(flops=int(flops), transcendentals=0,
                                      bytes_accessed=int(bytes_accessed)),
    )(*inputs)


# ----------------------------------------------------------------------------
if __name__ == "__main__":
    B = 2
    num_dims = 32               # activation feature dim per target layer
    num_layers = 3              # number of target layers with activation features
    inner_dims = (64, 16)       # AffinityAttackConfig.inner_dims
    num_final = 8               # AffinityAttackConfig.num_final
    dims = (16, 8, 4)           # fan-in of each target-model layer (PermInvModel dims)
    n_out_last = 2              # fan-out of the last target-model layer
    perm_inside_dims = (64, 8)  # PermInvModel default inside_dims

    key = jax.random.PRNGKey(0)
    k_param, k_x, *k_w = jax.random.split(key, 2 + len(dims))

    params = init_params(k_param, num_dims=num_dims, num_layers=num_layers,
                         inner_dims=inner_dims, num_final=num_final,
                         dims=dims, perm_inside_dims=perm_inside_dims)

    node_counts = tuple(dims[1:]) + (n_out_last,)
    packed = pack_params(params, dims=dims, node_counts=node_counts,
                         perm_inside_dims=perm_inside_dims)

    x = jax.random.normal(k_x, (num_layers, B, num_dims), jnp.float32)
    w_list = [
        jax.random.normal(k_w[i], (B, node_counts[i], dims[i] + 1), jnp.float32)
        for i in range(len(dims))
    ]

    out = weight_and_act_meta_forward(
        packed, w_list, x, num_final=num_final, node_counts=node_counts,
        perm_inside_dims=perm_inside_dims)
    out = jax.block_until_ready(out)
    assert out.shape == (B, 1) and out.dtype == jnp.float32
    print("KERNEL_OK")
</pallas_src>

<mosaic_0001>
module attributes {stable_mosaic.version = 11 : i64} {
  func.func @kernel(%arg0: memref<3x2x32xf32, #tpu.memory_space<vmem>>, %arg1: memref<3x32x64xf32, #tpu.memory_space<vmem>>, %arg2: memref<3x1x64xf32, #tpu.memory_space<vmem>>, %arg3: memref<3x64x16xf32, #tpu.memory_space<vmem>>, %arg4: memref<3x1x16xf32, #tpu.memory_space<vmem>>, %arg5: memref<3x16x8xf32, #tpu.memory_space<vmem>>, %arg6: memref<3x1x8xf32, #tpu.memory_space<vmem>>, %arg7: memref<2x8x17xf32, #tpu.memory_space<vmem>>, %arg8: memref<2x4x9xf32, #tpu.memory_space<vmem>>, %arg9: memref<2x2x5xf32, #tpu.memory_space<vmem>>, %arg10: memref<17x64xf32, #tpu.memory_space<vmem>>, %arg11: memref<1x64xf32, #tpu.memory_space<vmem>>, %arg12: memref<64x8xf32, #tpu.memory_space<vmem>>, %arg13: memref<1x8xf32, #tpu.memory_space<vmem>>, %arg14: memref<9x64xf32, #tpu.memory_space<vmem>>, %arg15: memref<8x8x64xf32, #tpu.memory_space<vmem>>, %arg16: memref<1x64xf32, #tpu.memory_space<vmem>>, %arg17: memref<64x8xf32, #tpu.memory_space<vmem>>, %arg18: memref<1x8xf32, #tpu.memory_space<vmem>>, %arg19: memref<5x64xf32, #tpu.memory_space<vmem>>, %arg20: memref<4x8x64xf32, #tpu.memory_space<vmem>>, %arg21: memref<1x64xf32, #tpu.memory_space<vmem>>, %arg22: memref<64x8xf32, #tpu.memory_space<vmem>>, %arg23: memref<1x8xf32, #tpu.memory_space<vmem>>, %arg24: memref<48x1xf32, #tpu.memory_space<vmem>>, %arg25: memref<1x1xf32, #tpu.memory_space<vmem>>, %arg26: memref<2x1xf32, #tpu.memory_space<vmem>>) attributes {dimension_semantics = [], scalar_prefetch = 0 : i64, scratch_operands = 0 : i64, tpu.core_type = #tpu.core_type<tc>} {
    %c0 = arith.constant 0 : index
    %c0_0 = arith.constant 0 : index
    %0 = vector.load %arg24[%c0, %c0_0] : memref<48x1xf32, #tpu.memory_space<vmem>>, vector<48x1xf32>
    %c0_1 = arith.constant 0 : index
    %c0_2 = arith.constant 0 : index
    %1 = vector.load %arg25[%c0_1, %c0_2] : memref<1x1xf32, #tpu.memory_space<vmem>>, vector<1x1xf32>
    %2 = vector.shape_cast %1 : vector<1x1xf32> to vector<1x1xf32>
    %3 = vector.broadcast %2 : vector<1x1xf32> to vector<2x1xf32>
    %c0_3 = arith.constant 0 : index
    %c0_4 = arith.constant 0 : index
    %c0_5 = arith.constant 0 : index
    %4 = vector.load %arg0[%c0_3, %c0_4, %c0_5] : memref<3x2x32xf32, #tpu.memory_space<vmem>>, vector<1x2x32xf32>
    %5 = vector.shape_cast %4 : vector<1x2x32xf32> to vector<2x32xf32>
    %c0_6 = arith.constant 0 : index
    %c0_7 = arith.constant 0 : index
    %c0_8 = arith.constant 0 : index
    %6 = vector.load %arg1[%c0_6, %c0_7, %c0_8] : memref<3x32x64xf32, #tpu.memory_space<vmem>>, vector<1x32x64xf32>
    %7 = vector.shape_cast %6 : vector<1x32x64xf32> to vector<32x64xf32>
    %cst = arith.constant dense<0.000000e+00> : vector<2x64xf32>
    %8 = tpu.matmul %5, %7, %cst {dimension_numbers = #tpu.dot_dimension_numbers<[1], [0], [0], [1], [0, 0, 1, 1], [], []>} : vector<2x32xf32>, vector<32x64xf32>, vector<2x64xf32> -> vector<2x64xf32>
    %c0_9 = arith.constant 0 : index
    %c0_10 = arith.constant 0 : index
    %c0_11 = arith.constant 0 : index
    %9 = vector.load %arg2[%c0_9, %c0_10, %c0_11] : memref<3x1x64xf32, #tpu.memory_space<vmem>>, vector<1x1x64xf32>
    %10 = vector.shape_cast %9 : vector<1x1x64xf32> to vector<1x64xf32>
    %11 = vector.broadcast %10 : vector<1x64xf32> to vector<2x64xf32>
    %12 = arith.addf %8, %11 : vector<2x64xf32>
    %cst_12 = arith.constant 0.000000e+00 : f32
    %13 = vector.broadcast %cst_12 : f32 to vector<2x64xf32>
    %14 = arith.maximumf %12, %13 : vector<2x64xf32>
    %c0_13 = arith.constant 0 : index
    %c0_14 = arith.constant 0 : index
    %c0_15 = arith.constant 0 : index
    %15 = vector.load %arg3[%c0_13, %c0_14, %c0_15] : memref<3x64x16xf32, #tpu.memory_space<vmem>>, vector<1x64x16xf32>
    %16 = vector.shape_cast %15 : vector<1x64x16xf32> to vector<64x16xf32>
    %cst_16 = arith.constant dense<0.000000e+00> : vector<2x16xf32>
    %17 = tpu.matmul %14, %16, %cst_16 {dimension_numbers = #tpu.dot_dimension_numbers<[1], [0], [0], [1], [0, 0, 1, 1], [], []>} : vector<2x64xf32>, vector<64x16xf32>, vector<2x16xf32> -> vector<2x16xf32>
    %c0_17 = arith.constant 0 : index
    %c0_18 = arith.constant 0 : index
    %c0_19 = arith.constant 0 : index
    %18 = vector.load %arg4[%c0_17, %c0_18, %c0_19] : memref<3x1x16xf32, #tpu.memory_space<vmem>>, vector<1x1x16xf32>
    %19 = vector.shape_cast %18 : vector<1x1x16xf32> to vector<1x16xf32>
    %20 = vector.broadcast %19 : vector<1x16xf32> to vector<2x16xf32>
    %21 = arith.addf %17, %20 : vector<2x16xf32>
    %cst_20 = arith.constant 0.000000e+00 : f32
    %22 = vector.broadcast %cst_20 : f32 to vector<2x16xf32>
    %23 = arith.maximumf %21, %22 : vector<2x16xf32>
    %c0_21 = arith.constant 0 : index
    %c0_22 = arith.constant 0 : index
    %c0_23 = arith.constant 0 : index
    %24 = vector.load %arg5[%c0_21, %c0_22, %c0_23] : memref<3x16x8xf32, #tpu.memory_space<vmem>>, vector<1x16x8xf32>
    %25 = vector.shape_cast %24 : vector<1x16x8xf32> to vector<16x8xf32>
    %cst_24 = arith.constant dense<0.000000e+00> : vector<2x8xf32>
    %26 = tpu.matmul %23, %25, %cst_24 {dimension_numbers = #tpu.dot_dimension_numbers<[1], [0], [0], [1], [0, 0, 1, 1], [], []>} : vector<2x16xf32>, vector<16x8xf32>, vector<2x8xf32> -> vector<2x8xf32>
    %c0_25 = arith.constant 0 : index
    %c0_26 = arith.constant 0 : index
    %c0_27 = arith.constant 0 : index
    %27 = vector.load %arg6[%c0_25, %c0_26, %c0_27] : memref<3x1x8xf32, #tpu.memory_space<vmem>>, vector<1x1x8xf32>
    %28 = vector.shape_cast %27 : vector<1x1x8xf32> to vector<1x8xf32>
    %29 = vector.broadcast %28 : vector<1x8xf32> to vector<2x8xf32>
    %30 = arith.addf %26, %29 : vector<2x8xf32>
    %31 = vector.extract_strided_slice %0 {offsets = [0, 0], sizes = [8, 1], strides = [1, 1]} : vector<48x1xf32> to vector<8x1xf32>
    %cst_28 = arith.constant dense<0.000000e+00> : vector<2x1xf32>
    %32 = tpu.matmul %30, %31, %cst_28 {dimension_numbers = #tpu.dot_dimension_numbers<[1], [0], [0], [1], [0, 0, 1, 1], [], []>} : vector<2x8xf32>, vector<8x1xf32>, vector<2x1xf32> -> vector<2x1xf32>
    %33 = arith.addf %3, %32 : vector<2x1xf32>
    %c1 = arith.constant 1 : index
    %c0_29 = arith.constant 0 : index
    %c0_30 = arith.constant 0 : index
    %34 = vector.load %arg0[%c1, %c0_29, %c0_30] : memref<3x2x32xf32, #tpu.memory_space<vmem>>, vector<1x2x32xf32>
    %35 = vector.shape_cast %34 : vector<1x2x32xf32> to vector<2x32xf32>
    %c1_31 = arith.constant 1 : index
    %c0_32 = arith.constant 0 : index
    %c0_33 = arith.constant 0 : index
    %36 = vector.load %arg1[%c1_31, %c0_32, %c0_33] : memref<3x32x64xf32, #tpu.memory_space<vmem>>, vector<1x32x64xf32>
    %37 = vector.shape_cast %36 : vector<1x32x64xf32> to vector<32x64xf32>
    %cst_34 = arith.constant dense<0.000000e+00> : vector<2x64xf32>
    %38 = tpu.matmul %35, %37, %cst_34 {dimension_numbers = #tpu.dot_dimension_numbers<[1], [0], [0], [1], [0, 0, 1, 1], [], []>} : vector<2x32xf32>, vector<32x64xf32>, vector<2x64xf32> -> vector<2x64xf32>
    %c1_35 = arith.constant 1 : index
    %c0_36 = arith.constant 0 : index
    %c0_37 = arith.constant 0 : index
    %39 = vector.load %arg2[%c1_35, %c0_36, %c0_37] : memref<3x1x64xf32, #tpu.memory_space<vmem>>, vector<1x1x64xf32>
    %40 = vector.shape_cast %39 : vector<1x1x64xf32> to vector<1x64xf32>
    %41 = vector.broadcast %40 : vector<1x64xf32> to vector<2x64xf32>
    %42 = arith.addf %38, %41 : vector<2x64xf32>
    %cst_38 = arith.constant 0.000000e+00 : f32
    %43 = vector.broadcast %cst_38 : f32 to vector<2x64xf32>
    %44 = arith.maximumf %42, %43 : vector<2x64xf32>
    %c1_39 = arith.constant 1 : index
    %c0_40 = arith.constant 0 : index
    %c0_41 = arith.constant 0 : index
    %45 = vector.load %arg3[%c1_39, %c0_40, %c0_41] : memref<3x64x16xf32, #tpu.memory_space<vmem>>, vector<1x64x16xf32>
    %46 = vector.shape_cast %45 : vector<1x64x16xf32> to vector<64x16xf32>
    %cst_42 = arith.constant dense<0.000000e+00> : vector<2x16xf32>
    %47 = tpu.matmul %44, %46, %cst_42 {dimension_numbers = #tpu.dot_dimension_numbers<[1], [0], [0], [1], [0, 0, 1, 1], [], []>} : vector<2x64xf32>, vector<64x16xf32>, vector<2x16xf32> -> vector<2x16xf32>
    %c1_43 = arith.constant 1 : index
    %c0_44 = arith.constant 0 : index
    %c0_45 = arith.constant 0 : index
    %48 = vector.load %arg4[%c1_43, %c0_44, %c0_45] : memref<3x1x16xf32, #tpu.memory_space<vmem>>, vector<1x1x16xf32>
    %49 = vector.shape_cast %48 : vector<1x1x16xf32> to vector<1x16xf32>
    %50 = vector.broadcast %49 : vector<1x16xf32> to vector<2x16xf32>
    %51 = arith.addf %47, %50 : vector<2x16xf32>
    %cst_46 = arith.constant 0.000000e+00 : f32
    %52 = vector.broadcast %cst_46 : f32 to vector<2x16xf32>
    %53 = arith.maximumf %51, %52 : vector<2x16xf32>
    %c1_47 = arith.constant 1 : index
    %c0_48 = arith.constant 0 : index
    %c0_49 = arith.constant 0 : index
    %54 = vector.load %arg5[%c1_47, %c0_48, %c0_49] : memref<3x16x8xf32, #tpu.memory_space<vmem>>, vector<1x16x8xf32>
    %55 = vector.shape_cast %54 : vector<1x16x8xf32> to vector<16x8xf32>
    %cst_50 = arith.constant dense<0.000000e+00> : vector<2x8xf32>
    %56 = tpu.matmul %53, %55, %cst_50 {dimension_numbers = #tpu.dot_dimension_numbers<[1], [0], [0], [1], [0, 0, 1, 1], [], []>} : vector<2x16xf32>, vector<16x8xf32>, vector<2x8xf32> -> vector<2x8xf32>
    %c1_51 = arith.constant 1 : index
    %c0_52 = arith.constant 0 : index
    %c0_53 = arith.constant 0 : index
    %57 = vector.load %arg6[%c1_51, %c0_52, %c0_53] : memref<3x1x8xf32, #tpu.memory_space<vmem>>, vector<1x1x8xf32>
    %58 = vector.shape_cast %57 : vector<1x1x8xf32> to vector<1x8xf32>
    %59 = vector.broadcast %58 : vector<1x8xf32> to vector<2x8xf32>
    %60 = arith.addf %56, %59 : vector<2x8xf32>
    %61 = vector.extract_strided_slice %0 {offsets = [8, 0], sizes = [8, 1], strides = [1, 1]} : vector<48x1xf32> to vector<8x1xf32>
    %cst_54 = arith.constant dense<0.000000e+00> : vector<2x1xf32>
    %62 = tpu.matmul %60, %61, %cst_54 {dimension_numbers = #tpu.dot_dimension_numbers<[1], [0], [0], [1], [0, 0, 1, 1], [], []>} : vector<2x8xf32>, vector<8x1xf32>, vector<2x1xf32> -> vector<2x1xf32>
    %63 = arith.addf %33, %62 : vector<2x1xf32>
    %c2 = arith.constant 2 : index
    %c0_55 = arith.constant 0 : index
    %c0_56 = arith.constant 0 : index
    %64 = vector.load %arg0[%c2, %c0_55, %c0_56] : memref<3x2x32xf32, #tpu.memory_space<vmem>>, vector<1x2x32xf32>
    %65 = vector.shape_cast %64 : vector<1x2x32xf32> to vector<2x32xf32>
    %c2_57 = arith.constant 2 : index
    %c0_58 = arith.constant 0 : index
    %c0_59 = arith.constant 0 : index
    %66 = vector.load %arg1[%c2_57, %c0_58, %c0_59] : memref<3x32x64xf32, #tpu.memory_space<vmem>>, vector<1x32x64xf32>
    %67 = vector.shape_cast %66 : vector<1x32x64xf32> to vector<32x64xf32>
    %cst_60 = arith.constant dense<0.000000e+00> : vector<2x64xf32>
    %68 = tpu.matmul %65, %67, %cst_60 {dimension_numbers = #tpu.dot_dimension_numbers<[1], [0], [0], [1], [0, 0, 1, 1], [], []>} : vector<2x32xf32>, vector<32x64xf32>, vector<2x64xf32> -> vector<2x64xf32>
    %c2_61 = arith.constant 2 : index
    %c0_62 = arith.constant 0 : index
    %c0_63 = arith.constant 0 : index
    %69 = vector.load %arg2[%c2_61, %c0_62, %c0_63] : memref<3x1x64xf32, #tpu.memory_space<vmem>>, vector<1x1x64xf32>
    %70 = vector.shape_cast %69 : vector<1x1x64xf32> to vector<1x64xf32>
    %71 = vector.broadcast %70 : vector<1x64xf32> to vector<2x64xf32>
    %72 = arith.addf %68, %71 : vector<2x64xf32>
    %cst_64 = arith.constant 0.000000e+00 : f32
    %73 = vector.broadcast %cst_64 : f32 to vector<2x64xf32>
    %74 = arith.maximumf %72, %73 : vector<2x64xf32>
    %c2_65 = arith.constant 2 : index
    %c0_66 = arith.constant 0 : index
    %c0_67 = arith.constant 0 : index
    %75 = vector.load %arg3[%c2_65, %c0_66, %c0_67] : memref<3x64x16xf32, #tpu.memory_space<vmem>>, vector<1x64x16xf32>
    %76 = vector.shape_cast %75 : vector<1x64x16xf32> to vector<64x16xf32>
    %cst_68 = arith.constant dense<0.000000e+00> : vector<2x16xf32>
    %77 = tpu.matmul %74, %76, %cst_68 {dimension_numbers = #tpu.dot_dimension_numbers<[1], [0], [0], [1], [0, 0, 1, 1], [], []>} : vector<2x64xf32>, vector<64x16xf32>, vector<2x16xf32> -> vector<2x16xf32>
    %c2_69 = arith.constant 2 : index
    %c0_70 = arith.constant 0 : index
    %c0_71 = arith.constant 0 : index
    %78 = vector.load %arg4[%c2_69, %c0_70, %c0_71] : memref<3x1x16xf32, #tpu.memory_space<vmem>>, vector<1x1x16xf32>
    %79 = vector.shape_cast %78 : vector<1x1x16xf32> to vector<1x16xf32>
    %80 = vector.broadcast %79 : vector<1x16xf32> to vector<2x16xf32>
    %81 = arith.addf %77, %80 : vector<2x16xf32>
    %cst_72 = arith.constant 0.000000e+00 : f32
    %82 = vector.broadcast %cst_72 : f32 to vector<2x16xf32>
    %83 = arith.maximumf %81, %82 : vector<2x16xf32>
    %c2_73 = arith.constant 2 : index
    %c0_74 = arith.constant 0 : index
    %c0_75 = arith.constant 0 : index
    %84 = vector.load %arg5[%c2_73, %c0_74, %c0_75] : memref<3x16x8xf32, #tpu.memory_space<vmem>>, vector<1x16x8xf32>
    %85 = vector.shape_cast %84 : vector<1x16x8xf32> to vector<16x8xf32>
    %cst_76 = arith.constant dense<0.000000e+00> : vector<2x8xf32>
    %86 = tpu.matmul %83, %85, %cst_76 {dimension_numbers = #tpu.dot_dimension_numbers<[1], [0], [0], [1], [0, 0, 1, 1], [], []>} : vector<2x16xf32>, vector<16x8xf32>, vector<2x8xf32> -> vector<2x8xf32>
    %c2_77 = arith.constant 2 : index
    %c0_78 = arith.constant 0 : index
    %c0_79 = arith.constant 0 : index
    %87 = vector.load %arg6[%c2_77, %c0_78, %c0_79] : memref<3x1x8xf32, #tpu.memory_space<vmem>>, vector<1x1x8xf32>
    %88 = vector.shape_cast %87 : vector<1x1x8xf32> to vector<1x8xf32>
    %89 = vector.broadcast %88 : vector<1x8xf32> to vector<2x8xf32>
    %90 = arith.addf %86, %89 : vector<2x8xf32>
    %91 = vector.extract_strided_slice %0 {offsets = [16, 0], sizes = [8, 1], strides = [1, 1]} : vector<48x1xf32> to vector<8x1xf32>
    %cst_80 = arith.constant dense<0.000000e+00> : vector<2x1xf32>
    %92 = tpu.matmul %90, %91, %cst_80 {dimension_numbers = #tpu.dot_dimension_numbers<[1], [0], [0], [1], [0, 0, 1, 1], [], []>} : vector<2x8xf32>, vector<8x1xf32>, vector<2x1xf32> -> vector<2x1xf32>
    %93 = arith.addf %63, %92 : vector<2x1xf32>
    %c0_81 = arith.constant 0 : index
    %c0_82 = arith.constant 0 : index
    %94 = vector.load %arg10[%c0_81, %c0_82] : memref<17x64xf32, #tpu.memory_space<vmem>>, vector<17x64xf32>
    %c0_83 = arith.constant 0 : index
    %c0_84 = arith.constant 0 : index
    %95 = vector.load %arg11[%c0_83, %c0_84] : memref<1x64xf32, #tpu.memory_space<vmem>>, vector<1x64xf32>
    %c0_85 = arith.constant 0 : index
    %c0_86 = arith.constant 0 : index
    %96 = vector.load %arg12[%c0_85, %c0_86] : memref<64x8xf32, #tpu.memory_space<vmem>>, vector<64x8xf32>
    %c0_87 = arith.constant 0 : index
    %c0_88 = arith.constant 0 : index
    %97 = vector.load %arg13[%c0_87, %c0_88] : memref<1x8xf32, #tpu.memory_space<vmem>>, vector<1x8xf32>
    %c0_89 = arith.constant 0 : index
    %c0_90 = arith.constant 0 : index
    %c0_91 = arith.constant 0 : index
    %98 = vector.load %arg7[%c0_89, %c0_90, %c0_91] : memref<2x8x17xf32, #tpu.memory_space<vmem>>, vector<1x8x17xf32>
    %99 = vector.shape_cast %98 : vector<1x8x17xf32> to vector<8x17xf32>
    %cst_92 = arith.constant dense<0.000000e+00> : vector<8x64xf32>
    %100 = tpu.matmul %99, %94, %cst_92 {dimension_numbers = #tpu.dot_dimension_numbers<[1], [0], [0], [1], [0, 0, 1, 1], [], []>} : vector<8x17xf32>, vector<17x64xf32>, vector<8x64xf32> -> vector<8x64xf32>
    %101 = vector.broadcast %95 : vector<1x64xf32> to vector<8x64xf32>
    %102 = arith.addf %100, %101 : vector<8x64xf32>
    %cst_93 = arith.constant 0.000000e+00 : f32
    %103 = vector.broadcast %cst_93 : f32 to vector<8x64xf32>
    %104 = arith.maximumf %102, %103 : vector<8x64xf32>
    %cst_94 = arith.constant dense<0.000000e+00> : vector<8x8xf32>
    %105 = tpu.matmul %104, %96, %cst_94 {dimension_numbers = #tpu.dot_dimension_numbers<[1], [0], [0], [1], [0, 0, 1, 1], [], []>} : vector<8x64xf32>, vector<64x8xf32>, vector<8x8xf32> -> vector<8x8xf32>
    %106 = vector.broadcast %97 : vector<1x8xf32> to vector<8x8xf32>
    %107 = arith.addf %105, %106 : vector<8x8xf32>
    %cst_95 = arith.constant 0.000000e+00 : f32
    %108 = vector.broadcast %cst_95 : f32 to vector<8x8xf32>
    %109 = arith.maximumf %107, %108 : vector<8x8xf32>
    %cst_96 = arith.constant dense<0.000000e+00> : vector<8xf32>
    %110 = vector.multi_reduction <add>, %109, %cst_96 [0] : vector<8x8xf32> to vector<8xf32>
    %111 = vector.shape_cast %110 : vector<8xf32> to vector<1x8xf32>
    %c1_97 = arith.constant 1 : index
    %c0_98 = arith.constant 0 : index
    %c0_99 = arith.constant 0 : index
    %112 = vector.load %arg7[%c1_97, %c0_98, %c0_99] : memref<2x8x17xf32, #tpu.memory_space<vmem>>, vector<1x8x17xf32>
    %113 = vector.shape_cast %112 : vector<1x8x17xf32> to vector<8x17xf32>
    %cst_100 = arith.constant dense<0.000000e+00> : vector<8x64xf32>
    %114 = tpu.matmul %113, %94, %cst_100 {dimension_numbers = #tpu.dot_dimension_numbers<[1], [0], [0], [1], [0, 0, 1, 1], [], []>} : vector<8x17xf32>, vector<17x64xf32>, vector<8x64xf32> -> vector<8x64xf32>
    %115 = vector.broadcast %95 : vector<1x64xf32> to vector<8x64xf32>
    %116 = arith.addf %114, %115 : vector<8x64xf32>
    %cst_101 = arith.constant 0.000000e+00 : f32
    %117 = vector.broadcast %cst_101 : f32 to vector<8x64xf32>
    %118 = arith.maximumf %116, %117 : vector<8x64xf32>
    %cst_102 = arith.constant dense<0.000000e+00> : vector<8x8xf32>
    %119 = tpu.matmul %118, %96, %cst_102 {dimension_numbers = #tpu.dot_dimension_numbers<[1], [0], [0], [1], [0, 0, 1, 1], [], []>} : vector<8x64xf32>, vector<64x8xf32>, vector<8x8xf32> -> vector<8x8xf32>
    %120 = vector.broadcast %97 : vector<1x8xf32> to vector<8x8xf32>
    %121 = arith.addf %119, %120 : vector<8x8xf32>
    %cst_103 = arith.constant 0.000000e+00 : f32
    %122 = vector.broadcast %cst_103 : f32 to vector<8x8xf32>
    %123 = arith.maximumf %121, %122 : vector<8x8xf32>
    %cst_104 = arith.constant dense<0.000000e+00> : vector<8xf32>
    %124 = vector.multi_reduction <add>, %123, %cst_104 [0] : vector<8x8xf32> to vector<8xf32>
    %125 = vector.shape_cast %124 : vector<8xf32> to vector<1x8xf32>
    %126 = tpu.concatenate %111, %125 in 0 : vector<1x8xf32>, vector<1x8xf32> -> vector<2x8xf32>
    %127 = vector.extract_strided_slice %0 {offsets = [24, 0], sizes = [8, 1], strides = [1, 1]} : vector<48x1xf32> to vector<8x1xf32>
    %cst_105 = arith.constant dense<0.000000e+00> : vector<2x1xf32>
    %128 = tpu.matmul %126, %127, %cst_105 {dimension_numbers = #tpu.dot_dimension_numbers<[1], [0], [0], [1], [0, 0, 1, 1], [], []>} : vector<2x8xf32>, vector<8x1xf32>, vector<2x1xf32> -> vector<2x1xf32>
    %129 = arith.addf %93, %128 : vector<2x1xf32>
    %c0_106 = arith.constant 0 : index
    %c0_107 = arith.constant 0 : index
    %130 = vector.load %arg14[%c0_106, %c0_107] : memref<9x64xf32, #tpu.memory_space<vmem>>, vector<9x64xf32>
    %c0_108 = arith.constant 0 : index
    %c0_109 = arith.constant 0 : index
    %131 = vector.load %arg16[%c0_108, %c0_109] : memref<1x64xf32, #tpu.memory_space<vmem>>, vector<1x64xf32>
    %c0_110 = arith.constant 0 : index
    %c0_111 = arith.constant 0 : index
    %132 = vector.load %arg17[%c0_110, %c0_111] : memref<64x8xf32, #tpu.memory_space<vmem>>, vector<64x8xf32>
    %c0_112 = arith.constant 0 : index
    %c0_113 = arith.constant 0 : index
    %133 = vector.load %arg18[%c0_112, %c0_113] : memref<1x8xf32, #tpu.memory_space<vmem>>, vector<1x8xf32>
    %c0_114 = arith.constant 0 : index
    %c0_115 = arith.constant 0 : index
    %c0_116 = arith.constant 0 : index
    %134 = vector.load %arg8[%c0_114, %c0_115, %c0_116] : memref<2x4x9xf32, #tpu.memory_space<vmem>>, vector<1x4x9xf32>
    %135 = vector.shape_cast %134 : vector<1x4x9xf32> to vector<4x9xf32>
    %cst_117 = arith.constant dense<0.000000e+00> : vector<4x64xf32>
    %136 = tpu.matmul %135, %130, %cst_117 {dimension_numbers = #tpu.dot_dimension_numbers<[1], [0], [0], [1], [0, 0, 1, 1], [], []>} : vector<4x9xf32>, vector<9x64xf32>, vector<4x64xf32> -> vector<4x64xf32>
    %137 = vector.broadcast %131 : vector<1x64xf32> to vector<4x64xf32>
    %138 = arith.addf %136, %137 : vector<4x64xf32>
    %cst_118 = arith.constant 0.000000e+00 : f32
    %139 = vector.broadcast %cst_118 : f32 to vector<1x64xf32>
    %140 = vector.extract_strided_slice %109 {offsets = [0, 0], sizes = [1, 8], strides = [1, 1]} : vector<8x8xf32> to vector<1x8xf32>
    %c0_119 = arith.constant 0 : index
    %c0_120 = arith.constant 0 : index
    %c0_121 = arith.constant 0 : index
    %141 = vector.load %arg15[%c0_119, %c0_120, %c0_121] : memref<8x8x64xf32, #tpu.memory_space<vmem>>, vector<1x8x64xf32>
    %142 = vector.shape_cast %141 : vector<1x8x64xf32> to vector<8x64xf32>
    %cst_122 = arith.constant dense<0.000000e+00> : vector<1x64xf32>
    %143 = tpu.matmul %140, %142, %cst_122 {dimension_numbers = #tpu.dot_dimension_numbers<[1], [0], [0], [1], [0, 0, 1, 1], [], []>} : vector<1x8xf32>, vector<8x64xf32>, vector<1x64xf32> -> vector<1x64xf32>
    %144 = arith.addf %139, %143 : vector<1x64xf32>
    %145 = vector.extract_strided_slice %109 {offsets = [1, 0], sizes = [1, 8], strides = [1, 1]} : vector<8x8xf32> to vector<1x8xf32>
    %c1_123 = arith.constant 1 : index
    %c0_124 = arith.constant 0 : index
    %c0_125 = arith.constant 0 : index
    %146 = vector.load %arg15[%c1_123, %c0_124, %c0_125] : memref<8x8x64xf32, #tpu.memory_space<vmem>>, vector<1x8x64xf32>
    %147 = vector.shape_cast %146 : vector<1x8x64xf32> to vector<8x64xf32>
    %cst_126 = arith.constant dense<0.000000e+00> : vector<1x64xf32>
    %148 = tpu.matmul %145, %147, %cst_126 {dimension_numbers = #tpu.dot_dimension_numbers<[1], [0], [0], [1], [0, 0, 1, 1], [], []>} : vector<1x8xf32>, vector<8x64xf32>, vector<1x64xf32> -> vector<1x64xf32>
    %149 = arith.addf %144, %148 : vector<1x64xf32>
    %150 = vector.extract_strided_slice %109 {offsets = [2, 0], sizes = [1, 8], strides = [1, 1]} : vector<8x8xf32> to vector<1x8xf32>
    %c2_127 = arith.constant 2 : index
    %c0_128 = arith.constant 0 : index
    %c0_129 = arith.constant 0 : index
    %151 = vector.load %arg15[%c2_127, %c0_128, %c0_129] : memref<8x8x64xf32, #tpu.memory_space<vmem>>, vector<1x8x64xf32>
    %152 = vector.shape_cast %151 : vector<1x8x64xf32> to vector<8x64xf32>
    %cst_130 = arith.constant dense<0.000000e+00> : vector<1x64xf32>
    %153 = tpu.matmul %150, %152, %cst_130 {dimension_numbers = #tpu.dot_dimension_numbers<[1], [0], [0], [1], [0, 0, 1, 1], [], []>} : vector<1x8xf32>, vector<8x64xf32>, vector<1x64xf32> -> vector<1x64xf32>
    %154 = arith.addf %149, %153 : vector<1x64xf32>
    %155 = vector.extract_strided_slice %109 {offsets = [3, 0], sizes = [1, 8], strides = [1, 1]} : vector<8x8xf32> to vector<1x8xf32>
    %c3 = arith.constant 3 : index
    %c0_131 = arith.constant 0 : index
    %c0_132 = arith.constant 0 : index
    %156 = vector.load %arg15[%c3, %c0_131, %c0_132] : memref<8x8x64xf32, #tpu.memory_space<vmem>>, vector<1x8x64xf32>
    %157 = vector.shape_cast %156 : vector<1x8x64xf32> to vector<8x64xf32>
    %cst_133 = arith.constant dense<0.000000e+00> : vector<1x64xf32>
    %158 = tpu.matmul %155, %157, %cst_133 {dimension_numbers = #tpu.dot_dimension_numbers<[1], [0], [0], [1], [0, 0, 1, 1], [], []>} : vector<1x8xf32>, vector<8x64xf32>, vector<1x64xf32> -> vector<1x64xf32>
    %159 = arith.addf %154, %158 : vector<1x64xf32>
    %160 = vector.extract_strided_slice %109 {offsets = [4, 0], sizes = [1, 8], strides = [1, 1]} : vector<8x8xf32> to vector<1x8xf32>
    %c4 = arith.constant 4 : index
    %c0_134 = arith.constant 0 : index
    %c0_135 = arith.constant 0 : index
    %161 = vector.load %arg15[%c4, %c0_134, %c0_135] : memref<8x8x64xf32, #tpu.memory_space<vmem>>, vector<1x8x64xf32>
    %162 = vector.shape_cast %161 : vector<1x8x64xf32> to vector<8x64xf32>
    %cst_136 = arith.constant dense<0.000000e+00> : vector<1x64xf32>
    %163 = tpu.matmul %160, %162, %cst_136 {dimension_numbers = #tpu.dot_dimension_numbers<[1], [0], [0], [1], [0, 0, 1, 1], [], []>} : vector<1x8xf32>, vector<8x64xf32>, vector<1x64xf32> -> vector<1x64xf32>
    %164 = arith.addf %159, %163 : vector<1x64xf32>
    %165 = vector.extract_strided_slice %109 {offsets = [5, 0], sizes = [1, 8], strides = [1, 1]} : vector<8x8xf32> to vector<1x8xf32>
    %c5 = arith.constant 5 : index
    %c0_137 = arith.constant 0 : index
    %c0_138 = arith.constant 0 : index
    %166 = vector.load %arg15[%c5, %c0_137, %c0_138] : memref<8x8x64xf32, #tpu.memory_space<vmem>>, vector<1x8x64xf32>
    %167 = vector.shape_cast %166 : vector<1x8x64xf32> to vector<8x64xf32>
    %cst_139 = arith.constant dense<0.000000e+00> : vector<1x64xf32>
    %168 = tpu.matmul %165, %167, %cst_139 {dimension_numbers = #tpu.dot_dimension_numbers<[1], [0], [0], [1], [0, 0, 1, 1], [], []>} : vector<1x8xf32>, vector<8x64xf32>, vector<1x64xf32> -> vector<1x64xf32>
    %169 = arith.addf %164, %168 : vector<1x64xf32>
    %170 = vector.extract_strided_slice %109 {offsets = [6, 0], sizes = [1, 8], strides = [1, 1]} : vector<8x8xf32> to vector<1x8xf32>
    %c6 = arith.constant 6 : index
    %c0_140 = arith.constant 0 : index
    %c0_141 = arith.constant 0 : index
    %171 = vector.load %arg15[%c6, %c0_140, %c0_141] : memref<8x8x64xf32, #tpu.memory_space<vmem>>, vector<1x8x64xf32>
    %172 = vector.shape_cast %171 : vector<1x8x64xf32> to vector<8x64xf32>
    %cst_142 = arith.constant dense<0.000000e+00> : vector<1x64xf32>
    %173 = tpu.matmul %170, %172, %cst_142 {dimension_numbers = #tpu.dot_dimension_numbers<[1], [0], [0], [1], [0, 0, 1, 1], [], []>} : vector<1x8xf32>, vector<8x64xf32>, vector<1x64xf32> -> vector<1x64xf32>
    %174 = arith.addf %169, %173 : vector<1x64xf32>
    %175 = vector.extract_strided_slice %109 {offsets = [7, 0], sizes = [1, 8], strides = [1, 1]} : vector<8x8xf32> to vector<1x8xf32>
    %c7 = arith.constant 7 : index
    %c0_143 = arith.constant 0 : index
    %c0_144 = arith.constant 0 : index
    %176 = vector.load %arg15[%c7, %c0_143, %c0_144] : memref<8x8x64xf32, #tpu.memory_space<vmem>>, vector<1x8x64xf32>
    %177 = vector.shape_cast %176 : vector<1x8x64xf32> to vector<8x64xf32>
    %cst_145 = arith.constant dense<0.000000e+00> : vector<1x64xf32>
    %178 = tpu.matmul %175, %177, %cst_145 {dimension_numbers = #tpu.dot_dimension_numbers<[1], [0], [0], [1], [0, 0, 1, 1], [], []>} : vector<1x8xf32>, vector<8x64xf32>, vector<1x64xf32> -> vector<1x64xf32>
    %179 = arith.addf %174, %178 : vector<1x64xf32>
    %180 = vector.broadcast %179 : vector<1x64xf32> to vector<4x64xf32>
    %181 = arith.addf %138, %180 : vector<4x64xf32>
    %cst_146 = arith.constant 0.000000e+00 : f32
    %182 = vector.broadcast %cst_146 : f32 to vector<4x64xf32>
    %183 = arith.maximumf %181, %182 : vector<4x64xf32>
    %cst_147 = arith.constant dense<0.000000e+00> : vector<4x8xf32>
    %184 = tpu.matmul %183, %132, %cst_147 {dimension_numbers = #tpu.dot_dimension_numbers<[1], [0], [0], [1], [0, 0, 1, 1], [], []>} : vector<4x64xf32>, vector<64x8xf32>, vector<4x8xf32> -> vector<4x8xf32>
    %185 = vector.broadcast %133 : vector<1x8xf32> to vector<4x8xf32>
    %186 = arith.addf %184, %185 : vector<4x8xf32>
    %cst_148 = arith.constant 0.000000e+00 : f32
    %187 = vector.broadcast %cst_148 : f32 to vector<4x8xf32>
    %188 = arith.maximumf %186, %187 : vector<4x8xf32>
    %cst_149 = arith.constant dense<0.000000e+00> : vector<8xf32>
    %189 = vector.multi_reduction <add>, %188, %cst_149 [0] : vector<4x8xf32> to vector<8xf32>
    %190 = vector.shape_cast %189 : vector<8xf32> to vector<1x8xf32>
    %c1_150 = arith.constant 1 : index
    %c0_151 = arith.constant 0 : index
    %c0_152 = arith.constant 0 : index
    %191 = vector.load %arg8[%c1_150, %c0_151, %c0_152] : memref<2x4x9xf32, #tpu.memory_space<vmem>>, vector<1x4x9xf32>
    %192 = vector.shape_cast %191 : vector<1x4x9xf32> to vector<4x9xf32>
    %cst_153 = arith.constant dense<0.000000e+00> : vector<4x64xf32>
    %193 = tpu.matmul %192, %130, %cst_153 {dimension_numbers = #tpu.dot_dimension_numbers<[1], [0], [0], [1], [0, 0, 1, 1], [], []>} : vector<4x9xf32>, vector<9x64xf32>, vector<4x64xf32> -> vector<4x64xf32>
    %194 = vector.broadcast %131 : vector<1x64xf32> to vector<4x64xf32>
    %195 = arith.addf %193, %194 : vector<4x64xf32>
    %cst_154 = arith.constant 0.000000e+00 : f32
    %196 = vector.broadcast %cst_154 : f32 to vector<1x64xf32>
    %197 = vector.extract_strided_slice %123 {offsets = [0, 0], sizes = [1, 8], strides = [1, 1]} : vector<8x8xf32> to vector<1x8xf32>
    %c0_155 = arith.constant 0 : index
    %c0_156 = arith.constant 0 : index
    %c0_157 = arith.constant 0 : index
    %198 = vector.load %arg15[%c0_155, %c0_156, %c0_157] : memref<8x8x64xf32, #tpu.memory_space<vmem>>, vector<1x8x64xf32>
    %199 = vector.shape_cast %198 : vector<1x8x64xf32> to vector<8x64xf32>
    %cst_158 = arith.constant dense<0.000000e+00> : vector<1x64xf32>
    %200 = tpu.matmul %197, %199, %cst_158 {dimension_numbers = #tpu.dot_dimension_numbers<[1], [0], [0], [1], [0, 0, 1, 1], [], []>} : vector<1x8xf32>, vector<8x64xf32>, vector<1x64xf32> -> vector<1x64xf32>
    %201 = arith.addf %196, %200 : vector<1x64xf32>
    %202 = vector.extract_strided_slice %123 {offsets = [1, 0], sizes = [1, 8], strides = [1, 1]} : vector<8x8xf32> to vector<1x8xf32>
    %c1_159 = arith.constant 1 : index
    %c0_160 = arith.constant 0 : index
    %c0_161 = arith.constant 0 : index
    %203 = vector.load %arg15[%c1_159, %c0_160, %c0_161] : memref<8x8x64xf32, #tpu.memory_space<vmem>>, vector<1x8x64xf32>
    %204 = vector.shape_cast %203 : vector<1x8x64xf32> to vector<8x64xf32>
    %cst_162 = arith.constant dense<0.000000e+00> : vector<1x64xf32>
    %205 = tpu.matmul %202, %204, %cst_162 {dimension_numbers = #tpu.dot_dimension_numbers<[1], [0], [0], [1], [0, 0, 1, 1], [], []>} : vector<1x8xf32>, vector<8x64xf32>, vector<1x64xf32> -> vector<1x64xf32>
    %206 = arith.addf %201, %205 : vector<1x64xf32>
    %207 = vector.extract_strided_slice %123 {offsets = [2, 0], sizes = [1, 8], strides = [1, 1]} : vector<8x8xf32> to vector<1x8xf32>
    %c2_163 = arith.constant 2 : index
    %c0_164 = arith.constant 0 : index
    %c0_165 = arith.constant 0 : index
    %208 = vector.load %arg15[%c2_163, %c0_164, %c0_165] : memref<8x8x64xf32, #tpu.memory_space<vmem>>, vector<1x8x64xf32>
    %209 = vector.shape_cast %208 : vector<1x8x64xf32> to vector<8x64xf32>
    %cst_166 = arith.constant dense<0.000000e+00> : vector<1x64xf32>
    %210 = tpu.matmul %207, %209, %cst_166 {dimension_numbers = #tpu.dot_dimension_numbers<[1], [0], [0], [1], [0, 0, 1, 1], [], []>} : vector<1x8xf32>, vector<8x64xf32>, vector<1x64xf32> -> vector<1x64xf32>
    %211 = arith.addf %206, %210 : vector<1x64xf32>
    %212 = vector.extract_strided_slice %123 {offsets = [3, 0], sizes = [1, 8], strides = [1, 1]} : vector<8x8xf32> to vector<1x8xf32>
    %c3_167 = arith.constant 3 : index
    %c0_168 = arith.constant 0 : index
    %c0_169 = arith.constant 0 : index
    %213 = vector.load %arg15[%c3_167, %c0_168, %c0_169] : memref<8x8x64xf32, #tpu.memory_space<vmem>>, vector<1x8x64xf32>
    %214 = vector.shape_cast %213 : vector<1x8x64xf32> to vector<8x64xf32>
    %cst_170 = arith.constant dense<0.000000e+00> : vector<1x64xf32>
    %215 = tpu.matmul %212, %214, %cst_170 {dimension_numbers = #tpu.dot_dimension_numbers<[1], [0], [0], [1], [0, 0, 1, 1], [], []>} : vector<1x8xf32>, vector<8x64xf32>, vector<1x64xf32> -> vector<1x64xf32>
    %216 = arith.addf %211, %215 : vector<1x64xf32>
    %217 = vector.extract_strided_slice %123 {offsets = [4, 0], sizes = [1, 8], strides = [1, 1]} : vector<8x8xf32> to vector<1x8xf32>
    %c4_171 = arith.constant 4 : index
    %c0_172 = arith.constant 0 : index
    %c0_173 = arith.constant 0 : index
    %218 = vector.load %arg15[%c4_171, %c0_172, %c0_173] : memref<8x8x64xf32, #tpu.memory_space<vmem>>, vector<1x8x64xf32>
    %219 = vector.shape_cast %218 : vector<1x8x64xf32> to vector<8x64xf32>
    %cst_174 = arith.constant dense<0.000000e+00> : vector<1x64xf32>
    %220 = tpu.matmul %217, %219, %cst_174 {dimension_numbers = #tpu.dot_dimension_numbers<[1], [0], [0], [1], [0, 0, 1, 1], [], []>} : vector<1x8xf32>, vector<8x64xf32>, vector<1x64xf32> -> vector<1x64xf32>
    %221 = arith.addf %216, %220 : vector<1x64xf32>
    %222 = vector.extract_strided_slice %123 {offsets = [5, 0], sizes = [1, 8], strides = [1, 1]} : vector<8x8xf32> to vector<1x8xf32>
    %c5_175 = arith.constant 5 : index
    %c0_176 = arith.constant 0 : index
    %c0_177 = arith.constant 0 : index
    %223 = vector.load %arg15[%c5_175, %c0_176, %c0_177] : memref<8x8x64xf32, #tpu.memory_space<vmem>>, vector<1x8x64xf32>
    %224 = vector.shape_cast %223 : vector<1x8x64xf32> to vector<8x64xf32>
    %cst_178 = arith.constant dense<0.000000e+00> : vector<1x64xf32>
    %225 = tpu.matmul %222, %224, %cst_178 {dimension_numbers = #tpu.dot_dimension_numbers<[1], [0], [0], [1], [0, 0, 1, 1], [], []>} : vector<1x8xf32>, vector<8x64xf32>, vector<1x64xf32> -> vector<1x64xf32>
    %226 = arith.addf %221, %225 : vector<1x64xf32>
    %227 = vector.extract_strided_slice %123 {offsets = [6, 0], sizes = [1, 8], strides = [1, 1]} : vector<8x8xf32> to vector<1x8xf32>
    %c6_179 = arith.constant 6 : index
    %c0_180 = arith.constant 0 : index
    %c0_181 = arith.constant 0 : index
    %228 = vector.load %arg15[%c6_179, %c0_180, %c0_181] : memref<8x8x64xf32, #tpu.memory_space<vmem>>, vector<1x8x64xf32>
    %229 = vector.shape_cast %228 : vector<1x8x64xf32> to vector<8x64xf32>
    %cst_182 = arith.constant dense<0.000000e+00> : vector<1x64xf32>
    %230 = tpu.matmul %227, %229, %cst_182 {dimension_numbers = #tpu.dot_dimension_numbers<[1], [0], [0], [1], [0, 0, 1, 1], [], []>} : vector<1x8xf32>, vector<8x64xf32>, vector<1x64xf32> -> vector<1x64xf32>
    %231 = arith.addf %226, %230 : vector<1x64xf32>
    %232 = vector.extract_strided_slice %123 {offsets = [7, 0], sizes = [1, 8], strides = [1, 1]} : vector<8x8xf32> to vector<1x8xf32>
    %c7_183 = arith.constant 7 : index
    %c0_184 = arith.constant 0 : index
    %c0_185 = arith.constant 0 : index
    %233 = vector.load %arg15[%c7_183, %c0_184, %c0_185] : memref<8x8x64xf32, #tpu.memory_space<vmem>>, vector<1x8x64xf32>
    %234 = vector.shape_cast %233 : vector<1x8x64xf32> to vector<8x64xf32>
    %cst_186 = arith.constant dense<0.000000e+00> : vector<1x64xf32>
    %235 = tpu.matmul %232, %234, %cst_186 {dimension_numbers = #tpu.dot_dimension_numbers<[1], [0], [0], [1], [0, 0, 1, 1], [], []>} : vector<1x8xf32>, vector<8x64xf32>, vector<1x64xf32> -> vector<1x64xf32>
    %236 = arith.addf %231, %235 : vector<1x64xf32>
    %237 = vector.broadcast %236 : vector<1x64xf32> to vector<4x64xf32>
    %238 = arith.addf %195, %237 : vector<4x64xf32>
    %cst_187 = arith.constant 0.000000e+00 : f32
    %239 = vector.broadcast %cst_187 : f32 to vector<4x64xf32>
    %240 = arith.maximumf %238, %239 : vector<4x64xf32>
    %cst_188 = arith.constant dense<0.000000e+00> : vector<4x8xf32>
    %241 = tpu.matmul %240, %132, %cst_188 {dimension_numbers = #tpu.dot_dimension_numbers<[1], [0], [0], [1], [0, 0, 1, 1], [], []>} : vector<4x64xf32>, vector<64x8xf32>, vector<4x8xf32> -> vector<4x8xf32>
    %242 = vector.broadcast %133 : vector<1x8xf32> to vector<4x8xf32>
    %243 = arith.addf %241, %242 : vector<4x8xf32>
    %cst_189 = arith.constant 0.000000e+00 : f32
    %244 = vector.broadcast %cst_189 : f32 to vector<4x8xf32>
    %245 = arith.maximumf %243, %244 : vector<4x8xf32>
    %cst_190 = arith.constant dense<0.000000e+00> : vector<8xf32>
    %246 = vector.multi_reduction <add>, %245, %cst_190 [0] : vector<4x8xf32> to vector<8xf32>
    %247 = vector.shape_cast %246 : vector<8xf32> to vector<1x8xf32>
    %248 = tpu.concatenate %190, %247 in 0 : vector<1x8xf32>, vector<1x8xf32> -> vector<2x8xf32>
    %249 = vector.extract_strided_slice %0 {offsets = [32, 0], sizes = [8, 1], strides = [1, 1]} : vector<48x1xf32> to vector<8x1xf32>
    %cst_191 = arith.constant dense<0.000000e+00> : vector<2x1xf32>
    %250 = tpu.matmul %248, %249, %cst_191 {dimension_numbers = #tpu.dot_dimension_numbers<[1], [0], [0], [1], [0, 0, 1, 1], [], []>} : vector<2x8xf32>, vector<8x1xf32>, vector<2x1xf32> -> vector<2x1xf32>
    %251 = arith.addf %129, %250 : vector<2x1xf32>
    %c0_192 = arith.constant 0 : index
    %c0_193 = arith.constant 0 : index
    %252 = vector.load %arg19[%c0_192, %c0_193] : memref<5x64xf32, #tpu.memory_space<vmem>>, vector<5x64xf32>
    %c0_194 = arith.constant 0 : index
    %c0_195 = arith.constant 0 : index
    %253 = vector.load %arg21[%c0_194, %c0_195] : memref<1x64xf32, #tpu.memory_space<vmem>>, vector<1x64xf32>
    %c0_196 = arith.constant 0 : index
    %c0_197 = arith.constant 0 : index
    %254 = vector.load %arg22[%c0_196, %c0_197] : memref<64x8xf32, #tpu.memory_space<vmem>>, vector<64x8xf32>
    %c0_198 = arith.constant 0 : index
    %c0_199 = arith.constant 0 : index
    %255 = vector.load %arg23[%c0_198, %c0_199] : memref<1x8xf32, #tpu.memory_space<vmem>>, vector<1x8xf32>
    %c0_200 = arith.constant 0 : index
    %c0_201 = arith.constant 0 : index
    %c0_202 = arith.constant 0 : index
    %256 = vector.load %arg9[%c0_200, %c0_201, %c0_202] : memref<2x2x5xf32, #tpu.memory_space<vmem>>, vector<1x2x5xf32>
    %257 = vector.shape_cast %256 : vector<1x2x5xf32> to vector<2x5xf32>
    %cst_203 = arith.constant dense<0.000000e+00> : vector<2x64xf32>
    %258 = tpu.matmul %257, %252, %cst_203 {dimension_numbers = #tpu.dot_dimension_numbers<[1], [0], [0], [1], [0, 0, 1, 1], [], []>} : vector<2x5xf32>, vector<5x64xf32>, vector<2x64xf32> -> vector<2x64xf32>
    %259 = vector.broadcast %253 : vector<1x64xf32> to vector<2x64xf32>
    %260 = arith.addf %258, %259 : vector<2x64xf32>
    %cst_204 = arith.constant 0.000000e+00 : f32
    %261 = vector.broadcast %cst_204 : f32 to vector<1x64xf32>
    %262 = vector.extract_strided_slice %188 {offsets = [0, 0], sizes = [1, 8], strides = [1, 1]} : vector<4x8xf32> to vector<1x8xf32>
    %c0_205 = arith.constant 0 : index
    %c0_206 = arith.constant 0 : index
    %c0_207 = arith.constant 0 : index
    %263 = vector.load %arg20[%c0_205, %c0_206, %c0_207] : memref<4x8x64xf32, #tpu.memory_space<vmem>>, vector<1x8x64xf32>
    %264 = vector.shape_cast %263 : vector<1x8x64xf32> to vector<8x64xf32>
    %cst_208 = arith.constant dense<0.000000e+00> : vector<1x64xf32>
    %265 = tpu.matmul %262, %264, %cst_208 {dimension_numbers = #tpu.dot_dimension_numbers<[1], [0], [0], [1], [0, 0, 1, 1], [], []>} : vector<1x8xf32>, vector<8x64xf32>, vector<1x64xf32> -> vector<1x64xf32>
    %266 = arith.addf %261, %265 : vector<1x64xf32>
    %267 = vector.extract_strided_slice %188 {offsets = [1, 0], sizes = [1, 8], strides = [1, 1]} : vector<4x8xf32> to vector<1x8xf32>
    %c1_209 = arith.constant 1 : index
    %c0_210 = arith.constant 0 : index
    %c0_211 = arith.constant 0 : index
    %268 = vector.load %arg20[%c1_209, %c0_210, %c0_211] : memref<4x8x64xf32, #tpu.memory_space<vmem>>, vector<1x8x64xf32>
    %269 = vector.shape_cast %268 : vector<1x8x64xf32> to vector<8x64xf32>
    %cst_212 = arith.constant dense<0.000000e+00> : vector<1x64xf32>
    %270 = tpu.matmul %267, %269, %cst_212 {dimension_numbers = #tpu.dot_dimension_numbers<[1], [0], [0], [1], [0, 0, 1, 1], [], []>} : vector<1x8xf32>, vector<8x64xf32>, vector<1x64xf32> -> vector<1x64xf32>
    %271 = arith.addf %266, %270 : vector<1x64xf32>
    %272 = vector.extract_strided_slice %188 {offsets = [2, 0], sizes = [1, 8], strides = [1, 1]} : vector<4x8xf32> to vector<1x8xf32>
    %c2_213 = arith.constant 2 : index
    %c0_214 = arith.constant 0 : index
    %c0_215 = arith.constant 0 : index
    %273 = vector.load %arg20[%c2_213, %c0_214, %c0_215] : memref<4x8x64xf32, #tpu.memory_space<vmem>>, vector<1x8x64xf32>
    %274 = vector.shape_cast %273 : vector<1x8x64xf32> to vector<8x64xf32>
    %cst_216 = arith.constant dense<0.000000e+00> : vector<1x64xf32>
    %275 = tpu.matmul %272, %274, %cst_216 {dimension_numbers = #tpu.dot_dimension_numbers<[1], [0], [0], [1], [0, 0, 1, 1], [], []>} : vector<1x8xf32>, vector<8x64xf32>, vector<1x64xf32> -> vector<1x64xf32>
    %276 = arith.addf %271, %275 : vector<1x64xf32>
    %277 = vector.extract_strided_slice %188 {offsets = [3, 0], sizes = [1, 8], strides = [1, 1]} : vector<4x8xf32> to vector<1x8xf32>
    %c3_217 = arith.constant 3 : index
    %c0_218 = arith.constant 0 : index
    %c0_219 = arith.constant 0 : index
    %278 = vector.load %arg20[%c3_217, %c0_218, %c0_219] : memref<4x8x64xf32, #tpu.memory_space<vmem>>, vector<1x8x64xf32>
    %279 = vector.shape_cast %278 : vector<1x8x64xf32> to vector<8x64xf32>
    %cst_220 = arith.constant dense<0.000000e+00> : vector<1x64xf32>
    %280 = tpu.matmul %277, %279, %cst_220 {dimension_numbers = #tpu.dot_dimension_numbers<[1], [0], [0], [1], [0, 0, 1, 1], [], []>} : vector<1x8xf32>, vector<8x64xf32>, vector<1x64xf32> -> vector<1x64xf32>
    %281 = arith.addf %276, %280 : vector<1x64xf32>
    %282 = vector.broadcast %281 : vector<1x64xf32> to vector<2x64xf32>
    %283 = arith.addf %260, %282 : vector<2x64xf32>
    %cst_221 = arith.constant 0.000000e+00 : f32
    %284 = vector.broadcast %cst_221 : f32 to vector<2x64xf32>
    %285 = arith.maximumf %283, %284 : vector<2x64xf32>
    %cst_222 = arith.constant dense<0.000000e+00> : vector<2x8xf32>
    %286 = tpu.matmul %285, %254, %cst_222 {dimension_numbers = #tpu.dot_dimension_numbers<[1], [0], [0], [1], [0, 0, 1, 1], [], []>} : vector<2x64xf32>, vector<64x8xf32>, vector<2x8xf32> -> vector<2x8xf32>
    %287 = vector.broadcast %255 : vector<1x8xf32> to vector<2x8xf32>
    %288 = arith.addf %286, %287 : vector<2x8xf32>
    %cst_223 = arith.constant 0.000000e+00 : f32
    %289 = vector.broadcast %cst_223 : f32 to vector<2x8xf32>
    %290 = arith.maximumf %288, %289 : vector<2x8xf32>
    %cst_224 = arith.constant dense<0.000000e+00> : vector<8xf32>
    %291 = vector.multi_reduction <add>, %290, %cst_224 [0] : vector<2x8xf32> to vector<8xf32>
    %292 = vector.shape_cast %291 : vector<8xf32> to vector<1x8xf32>
    %c1_225 = arith.constant 1 : index
    %c0_226 = arith.constant 0 : index
    %c0_227 = arith.constant 0 : index
    %293 = vector.load %arg9[%c1_225, %c0_226, %c0_227] : memref<2x2x5xf32, #tpu.memory_space<vmem>>, vector<1x2x5xf32>
    %294 = vector.shape_cast %293 : vector<1x2x5xf32> to vector<2x5xf32>
    %cst_228 = arith.constant dense<0.000000e+00> : vector<2x64xf32>
    %295 = tpu.matmul %294, %252, %cst_228 {dimension_numbers = #tpu.dot_dimension_numbers<[1], [0], [0], [1], [0, 0, 1, 1], [], []>} : vector<2x5xf32>, vector<5x64xf32>, vector<2x64xf32> -> vector<2x64xf32>
    %296 = vector.broadcast %253 : vector<1x64xf32> to vector<2x64xf32>
    %297 = arith.addf %295, %296 : vector<2x64xf32>
    %cst_229 = arith.constant 0.000000e+00 : f32
    %298 = vector.broadcast %cst_229 : f32 to vector<1x64xf32>
    %299 = vector.extract_strided_slice %245 {offsets = [0, 0], sizes = [1, 8], strides = [1, 1]} : vector<4x8xf32> to vector<1x8xf32>
    %c0_230 = arith.constant 0 : index
    %c0_231 = arith.constant 0 : index
    %c0_232 = arith.constant 0 : index
    %300 = vector.load %arg20[%c0_230, %c0_231, %c0_232] : memref<4x8x64xf32, #tpu.memory_space<vmem>>, vector<1x8x64xf32>
    %301 = vector.shape_cast %300 : vector<1x8x64xf32> to vector<8x64xf32>
    %cst_233 = arith.constant dense<0.000000e+00> : vector<1x64xf32>
    %302 = tpu.matmul %299, %301, %cst_233 {dimension_numbers = #tpu.dot_dimension_numbers<[1], [0], [0], [1], [0, 0, 1, 1], [], []>} : vector<1x8xf32>, vector<8x64xf32>, vector<1x64xf32> -> vector<1x64xf32>
    %303 = arith.addf %298, %302 : vector<1x64xf32>
    %304 = vector.extract_strided_slice %245 {offsets = [1, 0], sizes = [1, 8], strides = [1, 1]} : vector<4x8xf32> to vector<1x8xf32>
    %c1_234 = arith.constant 1 : index
    %c0_235 = arith.constant 0 : index
    %c0_236 = arith.constant 0 : index
    %305 = vector.load %arg20[%c1_234, %c0_235, %c0_236] : memref<4x8x64xf32, #tpu.memory_space<vmem>>, vector<1x8x64xf32>
    %306 = vector.shape_cast %305 : vector<1x8x64xf32> to vector<8x64xf32>
    %cst_237 = arith.constant dense<0.000000e+00> : vector<1x64xf32>
    %307 = tpu.matmul %304, %306, %cst_237 {dimension_numbers = #tpu.dot_dimension_numbers<[1], [0], [0], [1], [0, 0, 1, 1], [], []>} : vector<1x8xf32>, vector<8x64xf32>, vector<1x64xf32> -> vector<1x64xf32>
    %308 = arith.addf %303, %307 : vector<1x64xf32>
    %309 = vector.extract_strided_slice %245 {offsets = [2, 0], sizes = [1, 8], strides = [1, 1]} : vector<4x8xf32> to vector<1x8xf32>
    %c2_238 = arith.constant 2 : index
    %c0_239 = arith.constant 0 : index
    %c0_240 = arith.constant 0 : index
    %310 = vector.load %arg20[%c2_238, %c0_239, %c0_240] : memref<4x8x64xf32, #tpu.memory_space<vmem>>, vector<1x8x64xf32>
    %311 = vector.shape_cast %310 : vector<1x8x64xf32> to vector<8x64xf32>
    %cst_241 = arith.constant dense<0.000000e+00> : vector<1x64xf32>
    %312 = tpu.matmul %309, %311, %cst_241 {dimension_numbers = #tpu.dot_dimension_numbers<[1], [0], [0], [1], [0, 0, 1, 1], [], []>} : vector<1x8xf32>, vector<8x64xf32>, vector<1x64xf32> -> vector<1x64xf32>
    %313 = arith.addf %308, %312 : vector<1x64xf32>
    %314 = vector.extract_strided_slice %245 {offsets = [3, 0], sizes = [1, 8], strides = [1, 1]} : vector<4x8xf32> to vector<1x8xf32>
    %c3_242 = arith.constant 3 : index
    %c0_243 = arith.constant 0 : index
    %c0_244 = arith.constant 0 : index
    %315 = vector.load %arg20[%c3_242, %c0_243, %c0_244] : memref<4x8x64xf32, #tpu.memory_space<vmem>>, vector<1x8x64xf32>
    %316 = vector.shape_cast %315 : vector<1x8x64xf32> to vector<8x64xf32>
    %cst_245 = arith.constant dense<0.000000e+00> : vector<1x64xf32>
    %317 = tpu.matmul %314, %316, %cst_245 {dimension_numbers = #tpu.dot_dimension_numbers<[1], [0], [0], [1], [0, 0, 1, 1], [], []>} : vector<1x8xf32>, vector<8x64xf32>, vector<1x64xf32> -> vector<1x64xf32>
    %318 = arith.addf %313, %317 : vector<1x64xf32>
    %319 = vector.broadcast %318 : vector<1x64xf32> to vector<2x64xf32>
    %320 = arith.addf %297, %319 : vector<2x64xf32>
    %cst_246 = arith.constant 0.000000e+00 : f32
    %321 = vector.broadcast %cst_246 : f32 to vector<2x64xf32>
    %322 = arith.maximumf %320, %321 : vector<2x64xf32>
    %cst_247 = arith.constant dense<0.000000e+00> : vector<2x8xf32>
    %323 = tpu.matmul %322, %254, %cst_247 {dimension_numbers = #tpu.dot_dimension_numbers<[1], [0], [0], [1], [0, 0, 1, 1], [], []>} : vector<2x64xf32>, vector<64x8xf32>, vector<2x8xf32> -> vector<2x8xf32>
    %324 = vector.broadcast %255 : vector<1x8xf32> to vector<2x8xf32>
    %325 = arith.addf %323, %324 : vector<2x8xf32>
    %cst_248 = arith.constant 0.000000e+00 : f32
    %326 = vector.broadcast %cst_248 : f32 to vector<2x8xf32>
    %327 = arith.maximumf %325, %326 : vector<2x8xf32>
    %cst_249 = arith.constant dense<0.000000e+00> : vector<8xf32>
    %328 = vector.multi_reduction <add>, %327, %cst_249 [0] : vector<2x8xf32> to vector<8xf32>
    %329 = vector.shape_cast %328 : vector<8xf32> to vector<1x8xf32>
    %330 = tpu.concatenate %292, %329 in 0 : vector<1x8xf32>, vector<1x8xf32> -> vector<2x8xf32>
    %331 = vector.extract_strided_slice %0 {offsets = [40, 0], sizes = [8, 1], strides = [1, 1]} : vector<48x1xf32> to vector<8x1xf32>
    %cst_250 = arith.constant dense<0.000000e+00> : vector<2x1xf32>
    %332 = tpu.matmul %330, %331, %cst_250 {dimension_numbers = #tpu.dot_dimension_numbers<[1], [0], [0], [1], [0, 0, 1, 1], [], []>} : vector<2x8xf32>, vector<8x1xf32>, vector<2x1xf32> -> vector<2x1xf32>
    %333 = arith.addf %251, %332 : vector<2x1xf32>
    %c0_251 = arith.constant 0 : index
    %c0_252 = arith.constant 0 : index
    %334 = vector.load %arg26[%c0_251, %c0_252] : memref<2x1xf32, #tpu.memory_space<vmem>>, vector<2x1xf32>
    tpu.vector_store %arg26[%c0_251, %c0_252], %333 {strides = array<i32>} : memref<2x1xf32, #tpu.memory_space<vmem>>, vector<2x1xf32>,
    return
  }
}

</mosaic_0001>

<bundles_post_ra>
// kernel: tpu_custom_call.1
= control target key start
LH: loop header
LB: loop body
LE: loop exit
PB: predicated region body
PF: predicated region fallthrough
CT: control target
= control target key end

     0   :  { %v4901_v0 = vmov 0.0   ;;  %vm4902_vm0 = vmmov 0   ;;  %vm110_vm1 = vcmask 261120   ;;  %vm200_vm2 = vcmask 523264   ;;  %s5787_s1 = inlined_call_operand.vmem [shape: f32[3,32,64], index: 1, kind: input, shape index: {}]   ;;  %s5788_s3 = inlined_call_operand.vmem [shape: f32[3,64,16], index: 3, kind: input, shape index: {}]   ;;  %s5789_s0 = inlined_call_operand.vmem [shape: f32[3,2,32], index: 0, kind: input, shape index: {}]   ;;  %s5790_s2 = inlined_call_operand.vmem [shape: f32[3,1,64], index: 2, kind: input, shape index: {}]   ;;  %s5791_s5 = inlined_call_operand.vmem [shape: f32[3,16,8], index: 5, kind: input, shape index: {}]   ;;  %s5792_s4 = inlined_call_operand.vmem [shape: f32[3,1,16], index: 4, kind: input, shape index: {}]   ;;  %s5793_s24 = inlined_call_operand.vmem [shape: f32[48,1], index: 24, kind: input, shape index: {}]   ;;  %s5794_s25 = inlined_call_operand.<no memory space> [shape: f32[1,1], index: 25, kind: input, shape index: {}]   ;;  %s5795_s6 = inlined_call_operand.vmem [shape: f32[3,1,8], index: 6, kind: input, shape index: {}]   ;;  %s5796_s12 = inlined_call_operand.vmem [shape: f32[64,8], index: 12, kind: input, shape index: {}]   ;;  %s5797_s10 = inlined_call_operand.vmem [shape: f32[17,64], index: 10, kind: input, shape index: {}]   ;;  %s5798_s7 = inlined_call_operand.vmem [shape: f32[2,8,17], index: 7, kind: input, shape index: {}]   ;;  %s5799_s11 = inlined_call_operand.vmem [shape: f32[1,64], index: 11, kind: input, shape index: {}]   ;;  %s5800_s14 = inlined_call_operand.vmem [shape: f32[9,64], index: 14, kind: input, shape index: {}]   ;;  %s5801_s8 = inlined_call_operand.vmem [shape: f32[2,4,9], index: 8, kind: input, shape index: {}]   ;;  %s5802_s15 = inlined_call_operand.vmem [shape: f32[8,8,64], index: 15, kind: input, shape index: {}]   ;;  %s5803_s13 = inlined_call_operand.vmem [shape: f32[1,8], index: 13, kind: input, shape index: {}]   ;;  %s5804_s17 = inlined_call_operand.vmem [shape: f32[64,8], index: 17, kind: input, shape index: {}]   ;;  %s5805_s16 = inlined_call_operand.vmem [shape: f32[1,64], index: 16, kind: input, shape index: {}]   ;;  %s5806_s18 = inlined_call_operand.vmem [shape: f32[1,8], index: 18, kind: input, shape index: {}]   ;;  %s5807_s20 = inlined_call_operand.vmem [shape: f32[4,8,64], index: 20, kind: input, shape index: {}]   ;;  %s5808_s19 = inlined_call_operand.vmem [shape: f32[5,64], index: 19, kind: input, shape index: {}]   ;;  %s5809_s9 = inlined_call_operand.vmem [shape: f32[2,2,5], index: 9, kind: input, shape index: {}]   ;;  %s5810_s22 = inlined_call_operand.vmem [shape: f32[64,8], index: 22, kind: input, shape index: {}]   ;;  %s5811_s21 = inlined_call_operand.vmem [shape: f32[1,64], index: 21, kind: input, shape index: {}]   ;;  %s5812_s23 = inlined_call_operand.vmem [shape: f32[1,8], index: 23, kind: input, shape index: {}]   ;;  %s5813_s26 = inlined_call_operand.vmem [shape: f32[2,1], index: 26, kind: output, shape index: {}]  }
   0x1   :  { %5824 = sst [smem:[#allocation3_spill]] %s5787_s1  ;;  %4482 = vmatprep.subr.mxu0 %v4901_v0  ;;  %4490 = vmatprep.mubr.msk.f32.mxu0 %vm4902_vm0, %v4901_v0  ;;  %vm284_vm3 = vcmask 130048   ;;  %vm358_vm4 = vcmask 64512   ;;  %vm1133_vm5 = vcmask 1040384   ;;  %vm1129_vm6 = vcmask 138240  }
   0x2   :  { %5825 = sst [smem:[#allocation4_spill]] %s5788_s3  ;;  %4493 = vmatprep.subr.mxu1 %v4901_v0  ;;  %4509 = vmatprep.mubr.msk.f32.mxu1 %vm4902_vm0, %v4901_v0  ;;  %vm1546_vm7 = vcmask 72704   ;;  %vm2314_vm8 = vcmask 60416   ;;  %vm3171_vm9 = vcmask 1044480   ;;  %vm3167_vm10 = vcmask 39936  }
   0x3   :  { %5826 = sst [smem:[#allocation5_spill]] %s5789_s0  ;;  %vm3632_vm11 = vcmask 58368   ;;  %vm4171_vm12 = vcmask 1024  }
   0x4   :  { %5827 = sst [smem:[#allocation6_spill]] %s5790_s2 }
   0x5   :  { %5828 = sst [smem:[#allocation7_spill]] %s5791_s5 }
   0x6   :  { %5829 = sst [smem:[#allocation8_spill]] %s5792_s4 }
   0x7   :  { %5830 = sst [smem:[#allocation9_spill]] %s5793_s24 }
   0x8   :  { %5831 = sst [smem:[#allocation10_spill]] %s5794_s25 }
   0x9   :  { %5832 = sst [smem:[#allocation11_spill]] %s5795_s6 }
   0xa   :  { %5833 = sst [smem:[#allocation12_spill]] %s5796_s12 }
   0xb   :  { %5834 = sst [smem:[#allocation13_spill]] %s5797_s10 }
   0xc   :  { %5835 = sst [smem:[#allocation14_spill]] %s5812_s23 }
   0xd   :  { %5836 = sst [smem:[#allocation15_spill]] %s5813_s26 }
   0xe   :  { %s5837_s25 = sld [smem:[#allocation3_spill]] }
   0xf   :  { %s5838_s0 = sld [smem:[#allocation4_spill]] }
  0x10   :  { %s5839_s6 = sld [smem:[#allocation5_spill]] }
  0x11   :  { %s5840_s5 = sld [smem:[#allocation6_spill]] }
  0x12   :  { %s5841_s30 = sld [smem:[#allocation7_spill]] }
  0x13   :  { %s5842_s2 = sld [smem:[#allocation8_spill]] }
  0x14   :  { %v102_v1 = vld [vmem:[%s5837_s25 + $0x18] sm:$0xff]  ;;  %v101_v2 = vld [vmem:[%s5837_s25 + $0x10] sm:$0xff]  ;;  %v100_v4 = vld [vmem:[%s5837_s25 + $0x8] sm:$0xff]  ;;  %s5843_s28 = sld [smem:[#allocation9_spill]] }
  0x15   :  { %4483 = vmatpush3.msra.mxu0 %v102_v1  ;;  %v192_v3 = vld [vmem:[%s5838_s0 + $0x38] sm:$0xff]  ;;  %v191_v5 = vld [vmem:[%s5838_s0 + $0x30] sm:$0xff]  ;;  %v190_v6 = vld [vmem:[%s5838_s0 + $0x28] sm:$0xff]  ;;  %s5844_s27 = sld [smem:[#allocation10_spill]] }
  0x16   :  { %4484 = vmatprep.subr.mxu0 %v4901_v0  ;;  %4494 = vmatpush3.msra.mxu1 %v192_v3  ;;  %v99_v7 = vld [vmem:[%s5837_s25] sm:$0xff]  ;;  %v188_v10 = vld [vmem:[%s5838_s0 + $0x18] sm:$0xff]  ;;  %v187_v11 = vld [vmem:[%s5838_s0 + $0x10] sm:$0xff]  ;;  %s5845_s23 = sld [smem:[#allocation11_spill]] }
  0x17   :  { %4485 = vmatpush3.msra.mxu0 %v101_v2  ;;  %4495 = vmatprep.subr.mxu1 %v4901_v0  ;;  %v98_v8 = vld [vmem:[%s5839_s6] sm:$0x3]  ;;  %v186_v12 = vld [vmem:[%s5838_s0 + $0x8] sm:$0xff]  ;;  %v4200_v27 = vld [vmem:[%s5838_s0 + $0x78] sm:$0xff]  ;;  %s5846_s1 = sld [smem:[#allocation12_spill]] }
  0x18   :  { %4486 = vmatprep.subr.mxu0 %v4901_v0  ;;  %4496 = vmatpush3.msra.mxu1 %v191_v5  ;;  %v189_v9 = vld [vmem:[%s5838_s0 + $0x20] sm:$0xff]  ;;  %v276_v19 = vld [vmem:[%s5841_s30 + $0x8] sm:$0xff]  ;;  %v4199_v28 = vld [vmem:[%s5838_s0 + $0x70] sm:$0xff] }
  0x19   :  { %4487 = vmatpush3.msra.mxu0 %v100_v4  ;;  %4497 = vmatprep.subr.mxu1 %v4901_v0  ;;  %v185_v13 = vld [vmem:[%s5838_s0] sm:$0xff]  ;;  %v4189_v33 = vld [vmem:[%s5837_s25 + $0x38] sm:$0xff]  ;;  %v4188_v35 = vld [vmem:[%s5837_s25 + $0x30] sm:$0xff] }
  0x1a   :  { %4488 = vmatprep.subr.mxu0 %v4901_v0  ;;  %4498 = vmatpush3.msra.mxu1 %v190_v6  ;;  %v4178_v14 = vld [vmem:[%s5840_s5] ss:$0 sm:$0xff]  ;;  %v4187_v36 = vld [vmem:[%s5837_s25 + $0x28] sm:$0xff]  ;;  %v4185_v38 = vld [vmem:[%s5839_s6 + $0x2] sm:$0x3] }
  0x1b   :  { %4489 = vmatpush3.msra.mxu0 %v99_v7  ;;  %4499 = vmatprep.subr.mxu1 %v4901_v0  ;;  %v275_v20 = vld [vmem:[%s5841_s30] sm:$0xff]  ;;  %v31_v29 = vstv %s5844_s27  ;;  %v4198_v39 = vld [vmem:[%s5838_s0 + $0x68] sm:$0xff]  ;;  %v4196_v41 = vld [vmem:[%s5838_s0 + $0x58] sm:$0xff] }
  0x1c   :  { %4491 = vmatmul.mubr.msk.f32.vlgmr.msra.gmra.mxu0 %vm110_vm1, %v98_v8  ;;  %4500 = vmatpush3.msra.mxu1 %v189_v9  ;;  %v4180_v21 = vld [vmem:[%s5842_s2] ss:$0 sm:$0xff]  ;;  %32 = vst [vmem:[#allocation2] sm:$0x1] %v31_v29  ;;  %v4195_v42 = vld [vmem:[%s5838_s0 + $0x50] sm:$0xff]  ;;  %v4194_v43 = vld [vmem:[%s5838_s0 + $0x48] sm:$0xff] }
  0x1d   :  { %4501 = vmatprep.subr.mxu1 %v4901_v0  ;;  %4512 = vmatprep.subr.mxu0 %v4901_v0  ;;  %v85_v26 = vld [vmem:[%s5843_s28] sm:$0xff]  ;;  %v4205_v52 = vld [vmem:[%s5841_s30 + $0x18] sm:$0xff]  ;;  %v4204_v53 = vld [vmem:[%s5841_s30 + $0x10] sm:$0xff] }
  0x1e   :  { %4502 = vmatpush3.msra.mxu1 %v188_v10  ;;  %4516 = vmatprep.mubr.msk.f32.mxu0 %vm4902_vm0, %v4901_v0  ;;  %v4182_v30 = vld [vmem:[%s5845_s23] ss:$0 sm:$0xff]  ;;  %v4191_v47 = vld [vmem:[%s5840_s5 + $0x1] ss:$0 sm:$0xff]  ;;  %v86_v59 = vld [vmem:[%s5843_s28 + $0x8] sm:$0xff] }
  0x1f   :  { %4503 = vmatprep.subr.mxu1 %v4901_v0  ;;  %4513 = vmatpush3.msra.mxu0 %v276_v19  ;;  %v4186_v37 = vld [vmem:[%s5837_s25 + $0x20] sm:$0xff]  ;;  %v4225_v60 = vld [vmem:[%s5838_s0 + $0xb8] sm:$0xff]  ;;  %v4224_v61 = vld [vmem:[%s5838_s0 + $0xb0] sm:$0xff] }
  0x20   :  { %4504 = vmatpush3.msra.mxu1 %v187_v11  ;;  %4514 = vmatprep.subr.mxu0 %v4901_v0  ;;  %v4197_v40 = vld [vmem:[%s5838_s0 + $0x60] sm:$0xff]  ;;  %v4214_v2 = vld [vmem:[%s5837_s25 + $0x58] sm:$0xff]  ;;  %v4213_v4 = vld [vmem:[%s5837_s25 + $0x50] sm:$0xff] }
  0x21   :  { %4505 = vmatprep.subr.mxu1 %v4901_v0  ;;  %4515 = vmatpush3.msra.mxu0 %v275_v20  ;;  %v4193_v44 = vld [vmem:[%s5838_s0 + $0x40] sm:$0xff]  ;;  %v4212_v5 = vld [vmem:[%s5837_s25 + $0x48] sm:$0xff]  ;;  %v4221_v10 = vld [vmem:[%s5838_s0 + $0x98] sm:$0xff] }
  0x22   :  { %4506 = vmatpush3.msra.mxu1 %v186_v12  ;;  %4519 = vmatprep.subr.mxu0 %v4901_v0  ;;  %v4202_v54 = vld [vmem:[%s5842_s2 + $0x1] ss:$0 sm:$0xff]  ;;  %v4210_v7 = vld [vmem:[%s5839_s6 + $0x4] sm:$0x3]  ;;  %v4223_v8 = vld [vmem:[%s5838_s0 + $0xa8] sm:$0xff] }
  0x23   :  { %4507 = vmatprep.subr.mxu1 %v4901_v0  ;;  %v4207_v62 = vld [vmem:[%s5845_s23 + $0x1] ss:$0 sm:$0xff]  ;;  %v4220_v11 = vld [vmem:[%s5838_s0 + $0x90] sm:$0xff]  ;;  %v4219_v12 = vld [vmem:[%s5838_s0 + $0x88] sm:$0xff] }
  0x24   :  { %4508 = vmatpush3.msra.mxu1 %v185_v13  ;;  %v4211_v6 = vld [vmem:[%s5837_s25 + $0x40] sm:$0xff]  ;;  %s5848_s25 = sld [smem:[#allocation14_spill]] }
  0x25   :  { %4535 = vmatprep.subr.mxu1 %v4901_v0  ;;  %v4222_v9 = vld [vmem:[%s5838_s0 + $0xa0] sm:$0xff] }
  0x26   :  { %v4218_v13 = vld [vmem:[%s5838_s0 + $0x80] sm:$0xff] }
  0x27   :  { %v4216_v19 = vld [vmem:[%s5840_s5 + $0x2] ss:$0 sm:$0xff]  ;;  %s5847_s5 = sld [smem:[#allocation13_spill]] }
  0xdc   :  { %v180_v15 = vpop.f32.mrf.mxu0 }
  0xdd   :  { %v181_v16 = vadd.f32 %v4178_v14, %v180_v15  ;;  %v4177_v14 = vld [vmem:[#allocation2] ss:$0 sm:$0xff] }
  0xde   :  { %v4492_v17 = vpop.f32.mrf.mxu0 }
  0xdf   :  { %v184_v18 = vmax.f32 %v181_v16, 0.0 }
  0xe1   :  { %4510 = vmatmul.mubr.msk.f32.vlgmr.msra.gmra.mxu1 %vm200_vm2, %v184_v18 }
  0xe2   :  { %4551 = vmatprep.mubr.msk.f32.mxu1 %vm4902_vm0, %v4901_v0  ;;  %4536 = vmatpush3.msra.mxu1 %v4200_v27 }
  0xe3   :  { %4537 = vmatprep.subr.mxu1 %v4901_v0 }
  0xe4   :  { %4538 = vmatpush3.msra.mxu1 %v4199_v28 }
  0xe5   :  { %4539 = vmatprep.subr.mxu1 %v4901_v0 }
  0xe6   :  { %4540 = vmatpush3.msra.mxu1 %v4198_v39 }
  0xe7   :  { %4541 = vmatprep.subr.mxu1 %v4901_v0 }
  0xe8   :  { %4542 = vmatpush3.msra.mxu1 %v4197_v40  ;;  %v1110_v40 = vld [vmem:[%s5847_s5 + $0x8] sm:$0xff] }
  0xe9   :  { %4543 = vmatprep.subr.mxu1 %v4901_v0 }
  0xea   :  { %4544 = vmatpush3.msra.mxu1 %v4196_v41  ;;  %v1109_v41 = vld [vmem:[%s5847_s5] sm:$0xff] }
  0xeb   :  { %4545 = vmatprep.subr.mxu1 %v4901_v0 }
  0xec   :  { %4546 = vmatpush3.msra.mxu1 %v4195_v42  ;;  %v1122_v42 = vld [vmem:[%s5798_s7] sm:$0xff] }
  0xed   :  { %4547 = vmatprep.subr.mxu1 %v4901_v0 }
  0xee   :  { %4548 = vmatpush3.msra.mxu1 %v4194_v43  ;;  %v4240_v43 = vld [vmem:[%s5798_s7 + $0x8] sm:$0xff] }
  0xef   :  { %4549 = vmatprep.subr.mxu1 %v4901_v0 }
  0xf0   :  { %4550 = vmatpush3.msra.mxu1 %v4193_v44  ;;  %v1117_v44 = vld [vmem:[%s5846_s1 + $0x20] sm:$0xff] }
  0xf1   :  { %4577 = vmatprep.subr.mxu1 %v4901_v0 }
 0x1a1   :  { %v270_v22 = vpop.f32.mrf.mxu1 }
 0x1a2   :  { %v271_v23 = vadd.f32 %v4180_v21, %v270_v22 }
 0x1a3   :  { %v4511_v24 = vpop.f32.mrf.mxu1 }
 0x1a4   :  { %v274_v25 = vmax.f32 %v271_v23, 0.0  ;;  %v4230_v24 = vld [vmem:[%s5841_s30 + $0x28] sm:$0xff] }
 0x1a6   :  { %4517 = vmatmul.mubr.msk.f32.vlgmr.msra.gmra.mxu0 %vm284_vm3, %v274_v25  ;;  %v4229_v25 = vld [vmem:[%s5841_s30 + $0x20] sm:$0xff] }
 0x1a7   :  { %4520 = vmatpush3.msra.mxu0 %v85_v26  ;;  %4521 = vmatprep.mubr.msk.f32.mxu0 %vm4902_vm0, %v4901_v0  ;;  %v4227_v26 = vld [vmem:[%s5842_s2 + $0x2] ss:$0 sm:$0xff] }
 0x1a8   :  { %4524 = vmatprep.subr.mxu0 %v4901_v0 }
 0x266   :  { %v354_v31 = vpop.f32.mrf.mxu0 }
 0x267   :  { %v355_v32 = vadd.f32 %v4182_v30, %v354_v31  ;;  %v87_v31 = vld [vmem:[%s5843_s28 + $0x10] sm:$0xff] }
 0x268   :  { %v4518_v34 = vpop.f32.mrf.mxu0 }
 0x269   :  { %4522 = vmatmul.mubr.msk.f32.vlgmr.msra.gmra.mxu0 %vm358_vm4, %v355_v32  ;;  %v1120_v32 = vld [vmem:[%s5846_s1 + $0x38] sm:$0xff]  ;;  %v1118_v34 = vld [vmem:[%s5846_s1 + $0x28] sm:$0xff] }
 0x26a   :  { %4525 = vmatpush3.msra.mxu0 %v4189_v33  ;;  %4532 = vmatprep.mubr.msk.f32.mxu0 %vm4902_vm0, %v4901_v0  ;;  %v1119_v33 = vld [vmem:[%s5846_s1 + $0x30] sm:$0xff] }
 0x26b   :  { %4526 = vmatprep.subr.mxu0 %v4901_v0 }
 0x26c   :  { %4527 = vmatpush3.msra.mxu0 %v4188_v35  ;;  %v4232_v35 = vld [vmem:[%s5845_s23 + $0x2] ss:$0 sm:$0xff] }
 0x26d   :  { %4528 = vmatprep.subr.mxu0 %v4901_v0 }
 0x26e   :  { %4529 = vmatpush3.msra.mxu0 %v4187_v36 }
 0x26f   :  { %4530 = vmatprep.subr.mxu0 %v4901_v0 }
 0x270   :  { %4531 = vmatpush3.msra.mxu0 %v4186_v37 }
 0x271   :  { %4533 = vmatmul.mubr.msk.f32.vlgmr.msra.gmra.mxu0 %vm110_vm1, %v4185_v38  ;;  %4554 = vmatprep.subr.mxu0 %v4901_v0  ;;  %v1111_v38 = vld [vmem:[%s5847_s5 + $0x10] sm:$0x1] }
 0x272   :  { %4558 = vmatprep.mubr.msk.f32.mxu0 %vm4902_vm0, %v4901_v0  ;;  %4555 = vmatpush3.msra.mxu0 %v4205_v52  ;;  %v4235_v52 = vld [vmem:[%s5799_s11] ss:$0 sm:$0xff] }
 0x273   :  { %4556 = vmatprep.subr.mxu0 %v4901_v0 }
 0x274   :  { %4557 = vmatpush3.msra.mxu0 %v4204_v53 }
 0x275   :  { %4561 = vmatprep.subr.mxu0 %v4901_v0 }
 0x329   :  { %v5185_v45 = vpop.f32.mrf.mxu0 }
 0x32a   :  { %v432_v15 = vadd.f32 %v4177_v14, %v5185_v45  ;;  %v1116_v45 = vld [vmem:[%s5846_s1 + $0x18] sm:$0xff] }
 0x32b   :  { %v4523_v46 = vpop.f32.mrf.mxu0 }
 0x32c   :  { %v1115_v46 = vld [vmem:[%s5846_s1 + $0x10] sm:$0xff] }
 0x331   :  { %v517_v48 = vpop.f32.mrf.mxu0 }
 0x332   :  { %v518_v49 = vadd.f32 %v4191_v47, %v517_v48  ;;  %v1114_v47 = vld [vmem:[%s5846_s1 + $0x8] sm:$0xff]  ;;  %v1113_v48 = vld [vmem:[%s5846_s1] sm:$0xff] }
 0x333   :  { %v4534_v50 = vpop.f32.mrf.mxu0 }
 0x334   :  { %v521_v51 = vmax.f32 %v518_v49, 0.0 }
 0x336   :  { %4552 = vmatmul.mubr.msk.f32.vlgmr.msra.gmra.mxu1 %vm200_vm2, %v521_v51 }
 0x337   :  { %4593 = vmatprep.mubr.msk.f32.mxu1 %vm4902_vm0, %v4901_v0  ;;  %4578 = vmatpush3.msra.mxu1 %v4225_v60 }
 0x338   :  { %4579 = vmatprep.subr.mxu1 %v4901_v0 }
 0x339   :  { %4580 = vmatpush3.msra.mxu1 %v4224_v61  ;;  %v5386_v61 = vld [vmem:[%s5800_s14 + $0x8] sm:$0x1] }
 0x33a   :  { %4581 = vmatprep.subr.mxu1 %v4901_v0 }
 0x33b   :  { %4582 = vmatpush3.msra.mxu1 %v4223_v8 }
 0x33c   :  { %4583 = vmatprep.subr.mxu1 %v4901_v0 }
 0x33d   :  { %4584 = vmatpush3.msra.mxu1 %v4222_v9  ;;  %v5424_v9 = vld [vmem:[%s5802_s15 + $0x10] sm:$0xff] }
 0x33e   :  { %4585 = vmatprep.subr.mxu1 %v4901_v0 }
 0x33f   :  { %4586 = vmatpush3.msra.mxu1 %v4221_v10 }
 0x340   :  { %4587 = vmatprep.subr.mxu1 %v4901_v0 }
 0x341   :  { %4588 = vmatpush3.msra.mxu1 %v4220_v11 }
 0x342   :  { %4589 = vmatprep.subr.mxu1 %v4901_v0 }
 0x343   :  { %4590 = vmatpush3.msra.mxu1 %v4219_v12 }
 0x344   :  { %4591 = vmatprep.subr.mxu1 %v4901_v0 }
 0x345   :  { %4592 = vmatpush3.msra.mxu1 %v4218_v13 }
 0x346   :  { %4617 = vmatprep.subr.mxu1 %v4901_v0 }
 0x3f6   :  { %v608_v55 = vpop.f32.mrf.mxu1 }
 0x3f7   :  { %v609_v56 = vadd.f32 %v4202_v54, %v608_v55 }
 0x3f8   :  { %v4553_v57 = vpop.f32.mrf.mxu1 }
 0x3f9   :  { %v612_v58 = vmax.f32 %v609_v56, 0.0 }
 0x3fb   :  { %4559 = vmatmul.mubr.msk.f32.vlgmr.msra.gmra.mxu0 %vm284_vm3, %v612_v58 }
 0x3fc   :  { %4562 = vmatpush3.msra.mxu0 %v86_v59  ;;  %4563 = vmatprep.mubr.msk.f32.mxu0 %vm4902_vm0, %v4901_v0 }
 0x3fd   :  { %4566 = vmatprep.subr.mxu0 %v4901_v0 }
 0x4bb   :  { %v693_v63 = vpop.f32.mrf.mxu0 }
 0x4bc   :  { %v694_v1 = vadd.f32 %v4207_v62, %v693_v63  ;;  %v5394_v62 = vld [vmem:[%s5800_s14] sm:$0xff] }
 0x4bd   :  { %v4560_v3 = vpop.f32.mrf.mxu0  ;;  %v1539_v63 = vld [vmem:[%s5801_s8] sm:$0xf] }
 0x4be   :  { %4564 = vmatmul.mubr.msk.f32.vlgmr.msra.gmra.mxu0 %vm358_vm4, %v694_v1  ;;  %v5407_v1 = vld [vmem:[%s5802_s15 + $0x8] sm:$0xff]  ;;  %v4238_v3 = vld [vmem:[%s5803_s13] ss:$0 sm:$0xff] }
 0x4bf   :  { %4567 = vmatpush3.msra.mxu0 %v4214_v2  ;;  %4574 = vmatprep.mubr.msk.f32.mxu0 %vm4902_vm0, %v4901_v0  ;;  %v88_v2 = vld [vmem:[%s5843_s28 + $0x18] sm:$0xff] }
 0x4c0   :  { %4568 = vmatprep.subr.mxu0 %v4901_v0 }
 0x4c1   :  { %4569 = vmatpush3.msra.mxu0 %v4213_v4 }
 0x4c2   :  { %4570 = vmatprep.subr.mxu0 %v4901_v0 }
 0x4c3   :  { %4571 = vmatpush3.msra.mxu0 %v4212_v5 }
 0x4c4   :  { %4572 = vmatprep.subr.mxu0 %v4901_v0 }
 0x4c5   :  { %4573 = vmatpush3.msra.mxu0 %v4211_v6 }
 0x4c6   :  { %4575 = vmatmul.mubr.msk.f32.vlgmr.msra.gmra.mxu0 %vm110_vm1, %v4210_v7  ;;  %4596 = vmatprep.subr.mxu0 %v4901_v0 }
 0x4c7   :  { %4600 = vmatprep.mubr.msk.f32.mxu0 %vm4902_vm0, %v4901_v0  ;;  %4597 = vmatpush3.msra.mxu0 %v4230_v24 }
 0x4c8   :  { %4598 = vmatprep.subr.mxu0 %v4901_v0 }
 0x4c9   :  { %4599 = vmatpush3.msra.mxu0 %v4229_v25 }
 0x4ca   :  { %4603 = vmatprep.subr.mxu0 %v4901_v0 }
 0x57e   :  { %v766_v16 = vpop.f32.mrf.mxu0 }
 0x57f   :  { %v5272_v17 = vadd.f32 %v766_v16, %v432_v15 }
 0x580   :  { %v4565_v18 = vpop.f32.mrf.mxu0 }
 0x586   :  { %v855_v20 = vpop.f32.mrf.mxu0 }
 0x587   :  { %v856_v21 = vadd.f32 %v4216_v19, %v855_v20 }
 0x588   :  { %v4576_v22 = vpop.f32.mrf.mxu0 }
 0x589   :  { %v859_v23 = vmax.f32 %v856_v21, 0.0 }
 0x58b   :  { %4594 = vmatmul.mubr.msk.f32.vlgmr.msra.gmra.mxu1 %vm200_vm2, %v859_v23  ;;  %v5452_v23 = vld [vmem:[%s5802_s15 + $0x30] sm:$0xff] }
 0x58c   :  { %4633 = vmatprep.mubr.msk.f32.mxu1 %vm4902_vm0, %v4901_v0  ;;  %4618 = vmatpush3.msra.mxu1 %v1120_v32 }
 0x58d   :  { %4619 = vmatprep.subr.mxu1 %v4901_v0 }
 0x58e   :  { %4620 = vmatpush3.msra.mxu1 %v1119_v33 }
 0x58f   :  { %4621 = vmatprep.subr.mxu1 %v4901_v0 }
 0x590   :  { %4622 = vmatpush3.msra.mxu1 %v1118_v34 }
 0x591   :  { %4623 = vmatprep.subr.mxu1 %v4901_v0 }
 0x592   :  { %4624 = vmatpush3.msra.mxu1 %v1117_v44 }
 0x593   :  { %4625 = vmatprep.subr.mxu1 %v4901_v0 }
 0x594   :  { %4626 = vmatpush3.msra.mxu1 %v1116_v45 }
 0x595   :  { %4627 = vmatprep.subr.mxu1 %v4901_v0 }
 0x596   :  { %4628 = vmatpush3.msra.mxu1 %v1115_v46 }
 0x597   :  { %4629 = vmatprep.subr.mxu1 %v4901_v0 }
 0x598   :  { %4630 = vmatpush3.msra.mxu1 %v1114_v47 }
 0x599   :  { %4631 = vmatprep.subr.mxu1 %v4901_v0 }
 0x59a   :  { %4632 = vmatpush3.msra.mxu1 %v1113_v48 }
 0x59b   :  { %4669 = vmatprep.subr.mxu1 %v4901_v0 }
 0x64b   :  { %v946_v27 = vpop.f32.mrf.mxu1 }
 0x64c   :  { %v947_v28 = vadd.f32 %v4227_v26, %v946_v27 }
 0x64d   :  { %v4595_v29 = vpop.f32.mrf.mxu1 }
 0x64e   :  { %v950_v30 = vmax.f32 %v947_v28, 0.0 }
 0x650   :  { %4601 = vmatmul.mubr.msk.f32.vlgmr.msra.gmra.mxu0 %vm284_vm3, %v950_v30 }
 0x651   :  { %4604 = vmatpush3.msra.mxu0 %v87_v31  ;;  %4605 = vmatprep.mubr.msk.f32.mxu0 %vm4902_vm0, %v4901_v0 }
 0x652   :  { %4608 = vmatprep.subr.mxu0 %v4901_v0 }
 0x710   :  { %v1031_v36 = vpop.f32.mrf.mxu0 }
 0x711   :  { %v1032_v37 = vadd.f32 %v4232_v35, %v1031_v36  ;;  %v5474_v35 = vld [vmem:[%s5802_s15 + $0x18] sm:$0xff] }
 0x712   :  { %v4602_v39 = vpop.f32.mrf.mxu0 }
 0x713   :  { %4606 = vmatmul.mubr.msk.f32.vlgmr.msra.gmra.mxu0 %vm358_vm4, %v1032_v37  ;;  %v5486_v37 = vld [vmem:[%s5802_s15 + $0x28] sm:$0xff]  ;;  %v5497_v39 = vld [vmem:[%s5802_s15 + $0x38] sm:$0xff] }
 0x714   :  { %4609 = vmatpush3.msk.msra.mxu0 %vm1133_vm5, %v1111_v38  ;;  %4614 = vmatprep.mubr.msk.f32.mxu0 %vm4902_vm0, %v4901_v0 }
 0x715   :  { %4610 = vmatprep.subr.mxu0 %v4901_v0 }
 0x716   :  { %4611 = vmatpush3.msra.mxu0 %v1110_v40 }
 0x717   :  { %4612 = vmatprep.subr.mxu0 %v4901_v0 }
 0x718   :  { %4613 = vmatpush3.msra.mxu0 %v1109_v41 }
 0x719   :  { %4615 = vmatmul.mubr.msk.f32.vlgmr.msra.gmra.mxu0 %vm1129_vm6, %v1122_v42  ;;  %4636 = vmatprep.subr.mxu0 %v4901_v0 }
 0x71a   :  { %4637 = vmatpush3.msk.msra.mxu0 %vm1133_vm5, %v1111_v38  ;;  %4642 = vmatprep.mubr.msk.f32.mxu0 %vm4902_vm0, %v4901_v0 }
 0x71b   :  { %4638 = vmatprep.subr.mxu0 %v4901_v0 }
 0x71c   :  { %4639 = vmatpush3.msra.mxu0 %v1110_v40 }
 0x71d   :  { %4640 = vmatprep.subr.mxu0 %v4901_v0 }
 0x71e   :  { %4641 = vmatpush3.msra.mxu0 %v1109_v41  ;;  %v4265_v41 = vld [vmem:[%s5801_s8 + $0x4] sm:$0xf] }
 0x71f   :  { %4643 = vmatmul.mubr.msk.f32.vlgmr.msra.gmra.mxu0 %vm1129_vm6, %v4240_v43  ;;  %4645 = vmatprep.subr.mxu0 %v4901_v0 }
 0x720   :  { %4646 = vmatpush3.msra.mxu0 %v1120_v32  ;;  %4661 = vmatprep.mubr.msk.f32.mxu0 %vm4902_vm0, %v4901_v0 }
 0x721   :  { %4647 = vmatprep.subr.mxu0 %v4901_v0 }
 0x722   :  { %4648 = vmatpush3.msra.mxu0 %v1119_v33  ;;  %v1623_v33 = vld [vmem:[%s5802_s15] sm:$0xff] }
 0x723   :  { %4649 = vmatprep.subr.mxu0 %v4901_v0 }
 0x724   :  { %4650 = vmatpush3.msra.mxu0 %v1118_v34 }
 0x725   :  { %4651 = vmatprep.subr.mxu0 %v4901_v0 }
 0x726   :  { %4652 = vmatpush3.msra.mxu0 %v1117_v44 }
 0x727   :  { %4653 = vmatprep.subr.mxu0 %v4901_v0 }
 0x728   :  { %4654 = vmatpush3.msra.mxu0 %v1116_v45 }
 0x729   :  { %4655 = vmatprep.subr.mxu0 %v4901_v0 }
 0x72a   :  { %4656 = vmatpush3.msra.mxu0 %v1115_v46 }
 0x72b   :  { %4657 = vmatprep.subr.mxu0 %v4901_v0 }
 0x72c   :  { %4658 = vmatpush3.msra.mxu0 %v1114_v47 }
 0x72d   :  { %4659 = vmatprep.subr.mxu0 %v4901_v0 }
 0x72e   :  { %4660 = vmatpush3.msra.mxu0 %v1113_v48  ;;  %v1537_v48 = vld [vmem:[%s5804_s17 + $0x38] sm:$0xff] }
 0x72f   :  { %4664 = vmatprep.subr.mxu0 %v4901_v0 }
 0x7d3   :  { %v1104_v49 = vpop.f32.mrf.mxu0 }
 0x7d4   :  { %v5372_v50 = vadd.f32 %v1104_v49, %v5272_v17  ;;  %v5439_v17 = vld [vmem:[%s5802_s15 + $0x20] sm:$0xff]  ;;  %v1536_v49 = vld [vmem:[%s5804_s17 + $0x30] sm:$0xff] }
 0x7d5   :  { %v4607_v51 = vpop.f32.mrf.mxu0 }
 0x7d6   :  { %v1535_v51 = vld [vmem:[%s5804_s17 + $0x28] sm:$0xff] }
 0x7d9   :  { %v1203_v53 = vpop.f32.mrf.mxu0 }
 0x7da   :  { %v1204_v54 = vadd.f32 %v4235_v52, %v1203_v53  ;;  %v1533_v53 = vld [vmem:[%s5804_s17 + $0x18] sm:$0xff] }
 0x7db   :  { %v4616_v55 = vpop.f32.mrf.mxu0 }
 0x7dc   :  { %v1207_v56 = vmax.f32 %v1204_v54, 0.0  ;;  %v1532_v54 = vld [vmem:[%s5804_s17 + $0x10] sm:$0xff]  ;;  %v1531_v55 = vld [vmem:[%s5804_s17 + $0x8] sm:$0xff] }
 0x7de   :  { %4634 = vmatmul.mubr.msk.f32.vlgmr.msra.gmra.mxu1 %vm200_vm2, %v1207_v56  ;;  %v1530_v56 = vld [vmem:[%s5804_s17] sm:$0xff] }
 0x7df   :  { %v1366_v57 = vpop.f32.mrf.mxu0  ;;  %4673 = vmatprep.mubr.msk.f32.mxu1 %vm4902_vm0, %v4901_v0  ;;  %4670 = vmatpush3.msk.msra.mxu1 %vm1133_vm5, %v5386_v61 }
 0x7e0   :  { %v1367_v58 = vadd.f32 %v4235_v52, %v1366_v57  ;;  %4671 = vmatprep.subr.mxu1 %v4901_v0  ;;  %v1534_v52 = vld [vmem:[%s5804_s17 + $0x20] sm:$0xff] }
 0x7e1   :  { %v4644_v59 = vpop.f32.mrf.mxu0  ;;  %4672 = vmatpush3.msra.mxu1 %v5394_v62 }
 0x7e2   :  { %v1370_v60 = vmax.f32 %v1367_v58, 0.0  ;;  %4674 = vmatmul.mubr.msk.f32.vlgmr.msra.gmra.mxu1 %vm1546_vm7, %v1539_v63  ;;  %4676 = vmatprep.subr.mxu1 %v4901_v0 }
 0x7e3   :  { %4678 = vmatprep.mubr.msk.f32.mxu1 %vm4902_vm0, %v4901_v0  ;;  %4677 = vmatpush3.msra.mxu1 %v5407_v1 }
 0x7e4   :  { %4662 = vmatmul.mubr.msk.f32.vlgmr.msra.gmra.mxu0 %vm200_vm2, %v1370_v60  ;;  %4686 = vmatprep.subr.mxu1 %v4901_v0 }
 0x7e5   :  { %4666 = vmatprep.mubr.msk.f32.mxu0 %vm4902_vm0, %v4901_v0  ;;  %4665 = vmatpush3.msra.mxu0 %v88_v2 }
 0x7e6   :  { %4681 = vmatprep.subr.mxu0 %v4901_v0 }
 0x89e   :  { %v1283_v4 = vpop.f32.mrf.mxu1 }
 0x89f   :  { %v1284_v5 = vadd.f32 %v4238_v3, %v1283_v4 }
 0x8a0   :  { %v4635_v6 = vpop.f32.mrf.mxu1 }
 0x8a1   :  { %v5418_v7 = vmax.f32 %v1284_v5, 0.0 }
 0x8a2   :  { %v5548_v46 = vpop.f32.mrf.mxu1 }
 0x8a3   :  { %v1627_v8 = vrot.slane %v5418_v7, 1  ;;  %v1288_v11 = vsel %vm358_vm4, %v5418_v7, 0.0  ;;  %v1774_v16 = vrot.slane %v5418_v7, 2  ;;  %v1926_v22 = vrot.slane %v5418_v7, 4 }
 0x8a4   :  { %v1440_v10 = vpop.f32.mrf.mxu0  ;;  %v1289_v13 = vrot.slane %v1288_v11, 4  ;;  %v2078_v27 = vrot.slane %v5418_v7, 6  ;;  %v1850_v36 = vrot.slane %v5418_v7, 3  ;;  %v2002_v38 = vrot.slane %v5418_v7, 5  ;;  %v4675_v47 = vpop.f32.mrf.mxu1 }
 0x8a5   :  { %v1441_v12 = vadd.f32 %v4238_v3, %v1440_v10  ;;  %4679 = vmatmul.mubr.msk.f32.vlgmr.msra.gmra.mxu1 %vm358_vm4, %v1627_v8  ;;  %v2154_v40 = vrot.slane %v5418_v7, 7 }
 0x8a6   :  { %v4663_v14 = vpop.f32.mrf.mxu0  ;;  %4687 = vmatpush3.msra.mxu1 %v5424_v9  ;;  %4688 = vmatprep.mubr.msk.f32.mxu1 %vm4902_vm0, %v4901_v0  ;;  %v1290_v18 = vadd.f32 %v1289_v13, %v1288_v11 }
 0x8a7   :  { %v5432_v15 = vmax.f32 %v1441_v12, 0.0  ;;  %4696 = vmatprep.subr.mxu1 %v4901_v0 }
 0x8a8   :  { %v1291_v19 = vrot.slane %v1290_v18, 2 }
 0x8a9   :  { %4689 = vmatmul.mubr.msk.f32.vlgmr.msra.gmra.mxu1 %vm358_vm4, %v1774_v16  ;;  %v1445_v20 = vsel %vm358_vm4, %v5432_v15, 0.0  ;;  %v2398_v42 = vrot.slane %v5432_v15, 1  ;;  %v2543_v43 = vrot.slane %v5432_v15, 2  ;;  %v2691_v44 = vrot.slane %v5432_v15, 4 }
 0x8aa   :  { %4697 = vmatpush3.msra.mxu1 %v5439_v17  ;;  %4698 = vmatprep.mubr.msk.f32.mxu1 %vm4902_vm0, %v4901_v0  ;;  %v1446_v21 = vrot.slane %v1445_v20, 4  ;;  %v1292_v24 = vadd.f32 %v1291_v19, %v1290_v18  ;;  %v2839_v45 = vrot.slane %v5432_v15, 6 }
 0x8ab   :  { %4706 = vmatprep.subr.mxu1 %v4901_v0 }
 0x8ac   :  { %v1447_v25 = vadd.f32 %v1446_v21, %v1445_v20  ;;  %v1293_v28 = vrot.slane %v1292_v24, 1 }
 0x8ad   :  { %4699 = vmatmul.mubr.msk.f32.vlgmr.msra.gmra.mxu1 %vm358_vm4, %v1926_v22 }
 0x8ae   :  { %4707 = vmatpush3.msra.mxu1 %v5452_v23  ;;  %4708 = vmatprep.mubr.msk.f32.mxu1 %vm4902_vm0, %v4901_v0  ;;  %v1448_v26 = vrot.slane %v1447_v25, 2  ;;  %v1294_v31 = vadd.f32 %v1293_v28, %v1292_v24 }
 0x8af   :  { %4716 = vmatprep.subr.mxu1 %v4901_v0 }
 0x8b0   :  { %v1449_v29 = vadd.f32 %v1448_v26, %v1447_v25 }
 0x8b1   :  { %4709 = vmatmul.mubr.msk.f32.vlgmr.msra.gmra.mxu1 %vm358_vm4, %v2078_v27 }
 0x8b2   :  { %v1450_v30 = vrot.slane %v1449_v29, 1  ;;  %4732 = vmatprep.mubr.msk.f32.mxu1 %vm4902_vm0, %v4901_v0  ;;  %4717 = vmatpush3.msra.mxu1 %v1537_v48 }
 0x8b3   :  { %4718 = vmatprep.subr.mxu1 %v4901_v0 }
 0x8b4   :  { %v1451_v32 = vadd.f32 %v1450_v30, %v1449_v29  ;;  %4719 = vmatpush3.msra.mxu1 %v1536_v49 }
 0x8b5   :  { %4720 = vmatprep.subr.mxu1 %v4901_v0 }
 0x8b6   :  { %v1452_v34 = vsel %vm1133_vm5, %v1294_v31, %v1451_v32  ;;  %4721 = vmatpush3.msra.mxu1 %v1535_v51  ;;  %v2617_v32 = vrot.slane %v5432_v15, 3 }
 0x8b7   :  { %4667 = vmatmul.mubr.msk.f32.vlgmr.msra.gmra.mxu0 %vm358_vm4, %v1452_v34  ;;  %4722 = vmatprep.subr.mxu1 %v4901_v0 }
 0x8b8   :  { %4682 = vmatpush3.msra.mxu0 %v1623_v33  ;;  %4683 = vmatprep.mubr.msk.f32.mxu0 %vm4902_vm0, %v4901_v0 }
 0x8b9   :  { %4691 = vmatprep.subr.mxu0 %v4901_v0  ;;  %4723 = vmatpush3.msra.mxu1 %v1534_v52 }
 0x8ba   :  { %4724 = vmatprep.subr.mxu1 %v4901_v0 }
 0x8bb   :  { %4684 = vmatmul.mubr.msk.f32.vlgmr.msra.gmra.mxu0 %vm358_vm4, %v5418_v7  ;;  %4725 = vmatpush3.msra.mxu1 %v1533_v53 }
 0x8bc   :  { %4692 = vmatpush3.msra.mxu0 %v5474_v35  ;;  %4693 = vmatprep.mubr.msk.f32.mxu0 %vm4902_vm0, %v4901_v0 }
 0x8bd   :  { %4701 = vmatprep.subr.mxu0 %v4901_v0  ;;  %4726 = vmatprep.subr.mxu1 %v4901_v0 }
 0x8be   :  { %4727 = vmatpush3.msra.mxu1 %v1532_v54 }
 0x8bf   :  { %4694 = vmatmul.mubr.msk.f32.vlgmr.msra.gmra.mxu0 %vm358_vm4, %v1850_v36  ;;  %4728 = vmatprep.subr.mxu1 %v4901_v0 }
 0x8c0   :  { %4702 = vmatpush3.msra.mxu0 %v5486_v37  ;;  %4703 = vmatprep.mubr.msk.f32.mxu0 %vm4902_vm0, %v4901_v0 }
 0x8c1   :  { %4711 = vmatprep.subr.mxu0 %v4901_v0  ;;  %4729 = vmatpush3.msra.mxu1 %v1531_v55 }
 0x8c2   :  { %4730 = vmatprep.subr.mxu1 %v4901_v0 }
 0x8c3   :  { %4704 = vmatmul.mubr.msk.f32.vlgmr.msra.gmra.mxu0 %vm358_vm4, %v2002_v38  ;;  %4731 = vmatpush3.msra.mxu1 %v1530_v56 }
 0x8c4   :  { %4712 = vmatpush3.msra.mxu0 %v5497_v39  ;;  %4713 = vmatprep.mubr.msk.f32.mxu0 %vm4902_vm0, %v4901_v0 }
 0x8c5   :  { %4735 = vmatprep.subr.mxu0 %v4901_v0  ;;  %4757 = vmatprep.subr.mxu1 %v4901_v0 }
 0x8c7   :  { %4714 = vmatmul.mubr.msk.f32.vlgmr.msra.gmra.mxu0 %vm358_vm4, %v2154_v40 }
 0x8c8   :  { %4736 = vmatpush3.msk.msra.mxu0 %vm1133_vm5, %v5386_v61  ;;  %4739 = vmatprep.mubr.msk.f32.mxu0 %vm4902_vm0, %v4901_v0 }
 0x8c9   :  { %4737 = vmatprep.subr.mxu0 %v4901_v0 }
 0x8ca   :  { %4738 = vmatpush3.msra.mxu0 %v5394_v62 }
 0x8cb   :  { %4740 = vmatmul.mubr.msk.f32.vlgmr.msra.gmra.mxu0 %vm1546_vm7, %v4265_v41  ;;  %4742 = vmatprep.subr.mxu0 %v4901_v0 }
 0x8cc   :  { %4743 = vmatpush3.msra.mxu0 %v5407_v1  ;;  %4744 = vmatprep.mubr.msk.f32.mxu0 %vm4902_vm0, %v4901_v0 }
 0x8cd   :  { %4747 = vmatprep.subr.mxu0 %v4901_v0 }
 0x8cf   :  { %4745 = vmatmul.mubr.msk.f32.vlgmr.msra.gmra.mxu0 %vm358_vm4, %v2398_v42 }
 0x8d0   :  { %4748 = vmatpush3.msra.mxu0 %v1623_v33  ;;  %4749 = vmatprep.mubr.msk.f32.mxu0 %vm4902_vm0, %v4901_v0 }
 0x8d1   :  { %4752 = vmatprep.subr.mxu0 %v4901_v0 }
 0x8d3   :  { %4750 = vmatmul.mubr.msk.f32.vlgmr.msra.gmra.mxu0 %vm358_vm4, %v5432_v15 }
 0x8d4   :  { %4753 = vmatpush3.msra.mxu0 %v5424_v9  ;;  %4754 = vmatprep.mubr.msk.f32.mxu0 %vm4902_vm0, %v4901_v0  ;;  %v2228_v9 = vlaneseq }
 0x8d5   :  { %4762 = vmatprep.subr.mxu0 %v4901_v0 }
 0x8d6   :  { %v2229_v14 = vshrl.u32 %v2228_v9, 7 }
 0x8d7   :  { %4755 = vmatmul.mubr.msk.f32.vlgmr.msra.gmra.mxu0 %vm358_vm4, %v2543_v43 }
 0x8d8   :  { %4763 = vmatpush3.msra.mxu0 %v5439_v17  ;;  %4764 = vmatprep.mubr.msk.f32.mxu0 %vm4902_vm0, %v4901_v0  ;;  %v5593_v20 = vsub.s32 0, %v2229_v14 }
 0x8d9   :  { %4772 = vmatprep.subr.mxu0 %v4901_v0 }
 0x8db   :  { %4765 = vmatmul.mubr.msk.f32.vlgmr.msra.gmra.mxu0 %vm358_vm4, %v2691_v44 }
 0x8dc   :  { %4773 = vmatpush3.msra.mxu0 %v5452_v23  ;;  %4774 = vmatprep.mubr.msk.f32.mxu0 %vm4902_vm0, %v4901_v0 }
 0x8dd   :  { %4782 = vmatprep.subr.mxu0 %v4901_v0 }
 0x8df   :  { %4775 = vmatmul.mubr.msk.f32.vlgmr.msra.gmra.mxu0 %vm358_vm4, %v2839_v45 }
 0x8e0   :  { %4798 = vmatprep.mubr.msk.f32.mxu0 %vm4902_vm0, %v4901_v0  ;;  %4783 = vmatpush3.msra.mxu0 %v1537_v48 }
 0x8e1   :  { %4784 = vmatprep.subr.mxu0 %v4901_v0 }
 0x8e2   :  { %4785 = vmatpush3.msra.mxu0 %v1536_v49 }
 0x8e3   :  { %4786 = vmatprep.subr.mxu0 %v4901_v0 }
 0x8e4   :  { %4787 = vmatpush3.msra.mxu0 %v1535_v51 }
 0x8e5   :  { %4788 = vmatprep.subr.mxu0 %v4901_v0 }
 0x8e6   :  { %4789 = vmatpush3.msra.mxu0 %v1534_v52 }
 0x8e7   :  { %4790 = vmatprep.subr.mxu0 %v4901_v0 }
 0x8e8   :  { %4791 = vmatpush3.msra.mxu0 %v1533_v53 }
 0x8e9   :  { %4792 = vmatprep.subr.mxu0 %v4901_v0 }
 0x8ea   :  { %4793 = vmatpush3.msra.mxu0 %v1532_v54 }
 0x8eb   :  { %4794 = vmatprep.subr.mxu0 %v4901_v0 }
 0x8ec   :  { %4795 = vmatpush3.msra.mxu0 %v1531_v55  ;;  %v4263_v55 = vld [vmem:[%s5806_s18] ss:$0 sm:$0xff] }
 0x8ed   :  { %4796 = vmatprep.subr.mxu0 %v4901_v0 }
 0x8ee   :  { %4797 = vmatpush3.msra.mxu0 %v1530_v56 }
 0x8ef   :  { %4821 = vmatprep.subr.mxu0 %v4901_v0 }
 0x965   :  { %v1696_v57 = vpop.f32.mrf.mxu1 }
 0x967   :  { %v4680_v58 = vpop.f32.mrf.mxu1 }
 0x969   :  { %v1843_v59 = vpop.f32.mrf.mxu1 }
 0x96b   :  { %v4690_v60 = vpop.f32.mrf.mxu1 }
 0x96d   :  { %v1995_v61 = vpop.f32.mrf.mxu1 }
 0x96f   :  { %v4700_v62 = vpop.f32.mrf.mxu1 }
 0x971   :  { %v2147_v63 = vpop.f32.mrf.mxu1 }
 0x973   :  { %v4710_v1 = vpop.f32.mrf.mxu1 }
 0x977   :  { %v1522_v2 = vpop.f32.mrf.mxu0 }
 0x978   :  { %v5591_v3 = vadd.f32 %v1522_v2, %v5372_v50  ;;  %v4245_v50 = vld [vmem:[%s5805_s16] ss:$0 sm:$0xff]  ;;  %v5630_v2 = vld [vmem:[%s5807_s20 + $0x10] sm:$0xff] }
 0x979   :  { %v4668_v4 = vpop.f32.mrf.mxu0  ;;  %v1620_v24 = vadd.f32 %v4245_v50, %v5548_v46 }
 0x97b   :  { %v1768_v5 = vpop.f32.mrf.mxu0 }
 0x97c   :  { %v1769_v6 = vadd.f32 %v1768_v5, %v1696_v57  ;;  %v89_v5 = vld [vmem:[%s5843_s28 + $0x20] sm:$0xff] }
 0x97d   :  { %v4685_v7 = vpop.f32.mrf.mxu0 }
 0x97e   :  { %v1847_v8 = vadd.f32 %v1843_v59, %v1769_v6 }
 0x97f   :  { %v1919_v10 = vpop.f32.mrf.mxu0 }
 0x980   :  { %v1923_v11 = vadd.f32 %v1919_v10, %v1847_v8 }
 0x981   :  { %v4695_v12 = vpop.f32.mrf.mxu0 }
 0x982   :  { %v1999_v13 = vadd.f32 %v1995_v61, %v1923_v11 }
 0x983   :  { %v2071_v16 = vpop.f32.mrf.mxu0 }
 0x984   :  { %v2075_v17 = vadd.f32 %v2071_v16, %v1999_v13 }
 0x985   :  { %v4705_v18 = vpop.f32.mrf.mxu0 }
 0x986   :  { %v2151_v19 = vadd.f32 %v2147_v63, %v2075_v17 }
 0x987   :  { %v2223_v21 = vpop.f32.mrf.mxu0 }
 0x988   :  { %v2227_v22 = vadd.f32 %v2223_v21, %v2151_v19 }
 0x989   :  { %v4715_v23 = vpop.f32.mrf.mxu0 }
 0x98a   :  { %v2231_v25 = vrot.slane %v2227_v22, %v5593_v20 }
 0x98b   :  { %v2393_v26 = vpop.f32.mrf.mxu0 }
 0x98c   :  { %v2232_v27 = vadd.f32 %v2231_v25, %v1620_v24  ;;  %v2394_v59 = vadd.f32 %v4245_v50, %v2393_v26 }
 0x98d   :  { %v4741_v28 = vpop.f32.mrf.mxu0 }
 0x98e   :  { %v2233_v29 = vmax.f32 %v2232_v27, 0.0  ;;  %v3149_v27 = vld [vmem:[%s5808_s19] sm:$0x1f]  ;;  %s5849_s19 = sld [smem:[#allocation15_spill]] }
 0x98f   :  { %v2467_v30 = vpop.f32.mrf.mxu0 }
 0x990   :  { %4733 = vmatmul.mubr.msk.f32.vlgmr.msra.gmra.mxu1 %vm200_vm2, %v2233_v29  ;;  %v3160_v29 = vld [vmem:[%s5809_s9] sm:$0x3] }
 0x991   :  { %4758 = vmatpush3.msra.mxu1 %v5474_v35  ;;  %v4746_v31 = vpop.f32.mrf.mxu0  ;;  %4759 = vmatprep.mubr.msk.f32.mxu1 %vm4902_vm0, %v4901_v0  ;;  %v2765_v35 = vrot.slane %v5432_v15, 5 }
 0x992   :  { %4767 = vmatprep.subr.mxu1 %v4901_v0 }
 0x993   :  { %v2539_v33 = vpop.f32.mrf.mxu0 }
 0x994   :  { %v2540_v34 = vadd.f32 %v2539_v33, %v2467_v30  ;;  %4760 = vmatmul.mubr.msk.f32.vlgmr.msra.gmra.mxu1 %vm358_vm4, %v2617_v32  ;;  %v4281_v30 = vld [vmem:[%s5807_s20 + $0x8] sm:$0xff]  ;;  %v3245_v32 = vld [vmem:[%s5807_s20] sm:$0xff]  ;;  %v5681_v33 = vld [vmem:[%s5807_s20 + $0x18] sm:$0xff] }
 0x995   :  { %4768 = vmatpush3.msra.mxu1 %v5486_v37  ;;  %v4751_v36 = vpop.f32.mrf.mxu0  ;;  %4769 = vmatprep.mubr.msk.f32.mxu1 %vm4902_vm0, %v4901_v0  ;;  %v2913_v37 = vrot.slane %v5432_v15, 7 }
 0x996   :  { %4777 = vmatprep.subr.mxu1 %v4901_v0  ;;  %v4290_v36 = vld [vmem:[%s5809_s9 + $0x2] sm:$0x3] }
 0x997   :  { %v2612_v38 = vpop.f32.mrf.mxu0 }
 0x998   :  { %v2616_v40 = vadd.f32 %v2612_v38, %v2540_v34  ;;  %4770 = vmatmul.mubr.msk.f32.vlgmr.msra.gmra.mxu1 %vm358_vm4, %v2765_v35 }
 0x999   :  { %4778 = vmatpush3.msra.mxu1 %v5497_v39  ;;  %v4756_v41 = vpop.f32.mrf.mxu0  ;;  %4779 = vmatprep.mubr.msk.f32.mxu1 %vm4902_vm0, %v4901_v0 }
 0x99a   :  { %4801 = vmatprep.subr.mxu1 %v4901_v0  ;;  %v3157_v41 = vld [vmem:[%s5810_s22 + $0x30] sm:$0xff] }
 0x99b   :  { %v2760_v42 = vpop.f32.mrf.mxu0 }
 0x99c   :  { %4780 = vmatmul.mubr.msk.f32.vlgmr.msra.gmra.mxu1 %vm358_vm4, %v2913_v37  ;;  %v3156_v37 = vld [vmem:[%s5810_s22 + $0x28] sm:$0xff] }
 0x99d   :  { %v4766_v43 = vpop.f32.mrf.mxu0  ;;  %4803 = vmatprep.mubr.msk.f32.mxu1 %vm4902_vm0, %v4901_v0  ;;  %4802 = vmatpush3.msra.mxu1 %v89_v5 }
 0x99e   :  { %4806 = vmatprep.subr.mxu1 %v4901_v0  ;;  %v3154_v43 = vld [vmem:[%s5810_s22 + $0x18] sm:$0xff] }
 0x99f   :  { %v2908_v44 = vpop.f32.mrf.mxu0 }
 0x9a1   :  { %v4776_v45 = vpop.f32.mrf.mxu0 }
 0x9a2   :  { %v3152_v45 = vld [vmem:[%s5810_s22 + $0x8] sm:$0xff] }
 0xa50   :  { %v2309_v46 = vpop.f32.mrf.mxu1 }
 0xa51   :  { %v2310_v60 = vadd.f32 %v4263_v55, %v2309_v46  ;;  %v3151_v46 = vld [vmem:[%s5810_s22] sm:$0xff] }
 0xa52   :  { %v4734_v47 = vpop.f32.mrf.mxu1 }
 0xa53   :  { %v5625_v63 = vmax.f32 %v2310_v60, 0.0 }
 0xa54   :  { %v2686_v39 = vpop.f32.mrf.mxu1 }
 0xa55   :  { %v2690_v48 = vadd.f32 %v2686_v39, %v2616_v40  ;;  %v3396_v4 = vrot.slane %v5625_v63, 2  ;;  %v2315_v6 = vsel %vm2314_vm8, %v5625_v63, 0.0  ;;  %v3249_v31 = vrot.slane %v5625_v63, 1  ;;  %v3158_v40 = vld [vmem:[%s5810_s22 + $0x38] sm:$0xff] }
 0xa56   :  { %v4761_v49 = vpop.f32.mrf.mxu1  ;;  %v2316_v7 = vrot.slane %v2315_v6, 4  ;;  %v3472_v34 = vrot.slane %v5625_v63, 3 }
 0xa57   :  { %v2764_v51 = vadd.f32 %v2760_v42, %v2690_v48  ;;  %v3155_v42 = vld [vmem:[%s5810_s22 + $0x20] sm:$0xff] }
 0xa58   :  { %v2834_v52 = vpop.f32.mrf.mxu1  ;;  %v2317_v9 = vadd.f32 %v2316_v7, %v2315_v6 }
 0xa59   :  { %v2838_v53 = vadd.f32 %v2834_v52, %v2764_v51 }
 0xa5a   :  { %v4771_v15 = vpop.f32.mrf.mxu1  ;;  %v2318_v14 = vrot.slane %v2317_v9, 2 }
 0xa5b   :  { %v2912_v54 = vadd.f32 %v2908_v44, %v2838_v53  ;;  %v3153_v44 = vld [vmem:[%s5810_s22 + $0x10] sm:$0xff] }
 0xa5c   :  { %v2982_v56 = vpop.f32.mrf.mxu1  ;;  %v2319_v19 = vadd.f32 %v2318_v14, %v2317_v9 }
 0xa5d   :  { %v2986_v57 = vadd.f32 %v2982_v56, %v2912_v54 }
 0xa5e   :  { %v4781_v58 = vpop.f32.mrf.mxu1  ;;  %v2320_v22 = vrot.slane %v2319_v19, 1 }
 0xa5f   :  { %v2990_v61 = vrot.slane %v2986_v57, %v5593_v20  ;;  %v4278_v57 = vld [vmem:[%s5811_s21] ss:$0 sm:$0xff] }
 0xa60   :  { %v2321_v25 = vadd.f32 %v2320_v22, %v2319_v19 }
 0xa61   :  { %v2991_v62 = vadd.f32 %v2990_v61, %v2394_v59 }
 0xa63   :  { %v2992_v1 = vmax.f32 %v2991_v62, 0.0 }
 0xa65   :  { %4799 = vmatmul.mubr.msk.f32.vlgmr.msra.gmra.mxu0 %vm200_vm2, %v2992_v1 }
 0xa66   :  { %4822 = vmatpush3.msra.mxu0 %v5630_v2  ;;  %4823 = vmatprep.mubr.msk.f32.mxu0 %vm4902_vm0, %v4901_v0 }
 0xa67   :  { %4831 = vmatprep.subr.mxu0 %v4901_v0 }
 0xa69   :  { %4824 = vmatmul.mubr.msk.f32.vlgmr.msra.gmra.mxu0 %vm358_vm4, %v3396_v4 }
 0xa6a   :  { %4847 = vmatprep.mubr.msk.f32.mxu0 %vm4902_vm0, %v4901_v0  ;;  %4832 = vmatpush3.msra.mxu0 %v3158_v40 }
 0xa6b   :  { %4833 = vmatprep.subr.mxu0 %v4901_v0 }
 0xa6c   :  { %4834 = vmatpush3.msra.mxu0 %v3157_v41 }
 0xa6d   :  { %4835 = vmatprep.subr.mxu0 %v4901_v0 }
 0xa6e   :  { %4836 = vmatpush3.msra.mxu0 %v3156_v37 }
 0xa6f   :  { %4837 = vmatprep.subr.mxu0 %v4901_v0 }
 0xa70   :  { %4838 = vmatpush3.msra.mxu0 %v3155_v42 }
 0xa71   :  { %4839 = vmatprep.subr.mxu0 %v4901_v0 }
 0xa72   :  { %4840 = vmatpush3.msra.mxu0 %v3154_v43 }
 0xa73   :  { %4841 = vmatprep.subr.mxu0 %v4901_v0 }
 0xa74   :  { %4842 = vmatpush3.msra.mxu0 %v3153_v44 }
 0xa75   :  { %4843 = vmatprep.subr.mxu0 %v4901_v0 }
 0xa76   :  { %4844 = vmatpush3.msra.mxu0 %v3152_v45 }
 0xa77   :  { %4845 = vmatprep.subr.mxu0 %v4901_v0 }
 0xa78   :  { %4846 = vmatpush3.msra.mxu0 %v3151_v46 }
 0xa79   :  { %4870 = vmatprep.subr.mxu0 %v4901_v0 }
 0xb25   :  { %v3062_v8 = vpop.f32.mrf.mxu0 }
 0xb26   :  { %v3063_v10 = vadd.f32 %v4263_v55, %v3062_v8 }
 0xb27   :  { %v4800_v11 = vpop.f32.mrf.mxu0 }
 0xb28   :  { %v5646_v12 = vmax.f32 %v3063_v10, 0.0 }
 0xb29   :  { %v5648_v13 = vpop.f32.mrf.mxu0 }
 0xb2a   :  { %v3067_v16 = vsel %vm2314_vm8, %v5646_v12, 0.0  ;;  %v3716_v35 = vrot.slane %v5646_v12, 1  ;;  %v3861_v38 = vrot.slane %v5646_v12, 2  ;;  %v3935_v7 = vrot.slane %v5646_v12, 3 }
 0xb2b   :  { %v3068_v17 = vrot.slane %v3067_v16, 4  ;;  %v4825_v18 = vpop.f32.mrf.mxu0 }
 0xb2d   :  { %v3069_v50 = vadd.f32 %v3068_v17, %v3067_v16 }
 0xb2f   :  { %v3070_v21 = vrot.slane %v3069_v50, 2 }
 0xb31   :  { %v3071_v23 = vadd.f32 %v3070_v21, %v3069_v50 }
 0xb33   :  { %v3072_v24 = vrot.slane %v3071_v23, 1 }
 0xb35   :  { %v3073_v26 = vadd.f32 %v3072_v24, %v3071_v23  ;;  %v90_v23 = vld [vmem:[%s5843_s28 + $0x28] sm:$0xff] }
 0xb37   :  { %v3074_v28 = vsel %vm1133_vm5, %v2321_v25, %v3073_v26 }
 0xb38   :  { %4804 = vmatmul.mubr.msk.f32.vlgmr.msra.gmra.mxu1 %vm358_vm4, %v3074_v28 }
 0xb39   :  { %4807 = vmatpush3.msk.msra.mxu1 %vm3171_vm9, %v3149_v27  ;;  %4808 = vmatprep.mubr.msk.f32.mxu1 %vm4902_vm0, %v4901_v0 }
 0xb3a   :  { %4811 = vmatprep.subr.mxu1 %v4901_v0 }
 0xb3c   :  { %4809 = vmatmul.mubr.msk.f32.vlgmr.msra.gmra.mxu1 %vm3167_vm10, %v3160_v29 }
 0xb3d   :  { %4812 = vmatpush3.msra.mxu1 %v4281_v30  ;;  %4813 = vmatprep.mubr.msk.f32.mxu1 %vm4902_vm0, %v4901_v0 }
 0xb3e   :  { %4816 = vmatprep.subr.mxu1 %v4901_v0 }
 0xb40   :  { %4814 = vmatmul.mubr.msk.f32.vlgmr.msra.gmra.mxu1 %vm358_vm4, %v3249_v31 }
 0xb41   :  { %4817 = vmatpush3.msra.mxu1 %v3245_v32  ;;  %4818 = vmatprep.mubr.msk.f32.mxu1 %vm4902_vm0, %v4901_v0 }
 0xb42   :  { %4826 = vmatprep.subr.mxu1 %v4901_v0 }
 0xb44   :  { %4819 = vmatmul.mubr.msk.f32.vlgmr.msra.gmra.mxu1 %vm358_vm4, %v5625_v63 }
 0xb45   :  { %4827 = vmatpush3.msra.mxu1 %v5681_v33  ;;  %4828 = vmatprep.mubr.msk.f32.mxu1 %vm4902_vm0, %v4901_v0 }
 0xb46   :  { %4850 = vmatprep.subr.mxu1 %v4901_v0 }
 0xb48   :  { %4829 = vmatmul.mubr.msk.f32.vlgmr.msra.gmra.mxu1 %vm358_vm4, %v3472_v34 }
 0xb49   :  { %4851 = vmatpush3.msk.msra.mxu1 %vm3171_vm9, %v3149_v27  ;;  %4852 = vmatprep.mubr.msk.f32.mxu1 %vm4902_vm0, %v4901_v0 }
 0xb4a   :  { %4855 = vmatprep.subr.mxu1 %v4901_v0 }
 0xb4c   :  { %4853 = vmatmul.mubr.msk.f32.vlgmr.msra.gmra.mxu1 %vm3167_vm10, %v4290_v36 }
 0xb4d   :  { %4856 = vmatpush3.msra.mxu1 %v4281_v30  ;;  %4857 = vmatprep.mubr.msk.f32.mxu1 %vm4902_vm0, %v4901_v0 }
 0xb4e   :  { %4860 = vmatprep.subr.mxu1 %v4901_v0 }
 0xb50   :  { %4858 = vmatmul.mubr.msk.f32.vlgmr.msra.gmra.mxu1 %vm358_vm4, %v3716_v35 }
 0xb51   :  { %4861 = vmatpush3.msra.mxu1 %v3245_v32  ;;  %4862 = vmatprep.mubr.msk.f32.mxu1 %vm4902_vm0, %v4901_v0 }
 0xb52   :  { %4865 = vmatprep.subr.mxu1 %v4901_v0 }
 0xb54   :  { %4863 = vmatmul.mubr.msk.f32.vlgmr.msra.gmra.mxu1 %vm358_vm4, %v5646_v12 }
 0xb55   :  { %4866 = vmatpush3.msra.mxu1 %v5630_v2  ;;  %4867 = vmatprep.mubr.msk.f32.mxu1 %vm4902_vm0, %v4901_v0 }
 0xb56   :  { %4875 = vmatprep.subr.mxu1 %v4901_v0 }
 0xb58   :  { %4868 = vmatmul.mubr.msk.f32.vlgmr.msra.gmra.mxu1 %vm358_vm4, %v3861_v38 }
 0xb59   :  { %4891 = vmatprep.mubr.msk.f32.mxu1 %vm4902_vm0, %v4901_v0  ;;  %4876 = vmatpush3.msra.mxu1 %v3158_v40 }
 0xb5a   :  { %4877 = vmatprep.subr.mxu1 %v4901_v0 }
 0xb5b   :  { %4878 = vmatpush3.msra.mxu1 %v3157_v41 }
 0xb5c   :  { %4879 = vmatprep.subr.mxu1 %v4901_v0 }
 0xb5d   :  { %4880 = vmatpush3.msra.mxu1 %v3156_v37 }
 0xb5e   :  { %4881 = vmatprep.subr.mxu1 %v4901_v0 }
 0xb5f   :  { %4882 = vmatpush3.msra.mxu1 %v3155_v42 }
 0xb60   :  { %4883 = vmatprep.subr.mxu1 %v4901_v0 }
 0xb61   :  { %4884 = vmatpush3.msra.mxu1 %v3154_v43 }
 0xb62   :  { %4885 = vmatprep.subr.mxu1 %v4901_v0 }
 0xb63   :  { %4886 = vmatpush3.msra.mxu1 %v3153_v44 }
 0xb64   :  { %4887 = vmatprep.subr.mxu1 %v4901_v0 }
 0xb65   :  { %4888 = vmatpush3.msra.mxu1 %v3152_v45 }
 0xb66   :  { %4889 = vmatprep.subr.mxu1 %v4901_v0 }
 0xb67   :  { %4890 = vmatpush3.msra.mxu1 %v3151_v46 }
 0xbf8   :  { %v3144_v47 = vpop.f32.mrf.mxu1 }
 0xbf9   :  { %v5757_v39 = vadd.f32 %v3144_v47, %v5591_v3 }
 0xbfa   :  { %v4805_v48 = vpop.f32.mrf.mxu1 }
 0xbfc   :  { %v3241_v49 = vpop.f32.mrf.mxu1 }
 0xbfd   :  { %v3242_v61 = vadd.f32 %v4278_v57, %v3241_v49 }
 0xbfe   :  { %v4810_v51 = vpop.f32.mrf.mxu1 }
 0xc00   :  { %v3318_v52 = vpop.f32.mrf.mxu1 }
 0xc02   :  { %v4815_v53 = vpop.f32.mrf.mxu1 }
 0xc04   :  { %v3390_v15 = vpop.f32.mrf.mxu1 }
 0xc05   :  { %v3391_v54 = vadd.f32 %v3390_v15, %v3318_v52 }
 0xc06   :  { %v4820_v55 = vpop.f32.mrf.mxu1 }
 0xc07   :  { %v3469_v56 = vadd.f32 %v5648_v13, %v3391_v54 }
 0xc08   :  { %v3541_v58 = vpop.f32.mrf.mxu1 }
 0xc09   :  { %v3545_v59 = vadd.f32 %v3541_v58, %v3469_v56 }
 0xc0a   :  { %v4830_v60 = vpop.f32.mrf.mxu1 }
 0xc0b   :  { %v3549_v3 = vrot.slane %v3545_v59, %v5593_v20 }
 0xc0c   :  { %v3711_v62 = vpop.f32.mrf.mxu1 }
 0xc0d   :  { %v3550_v63 = vadd.f32 %v3549_v3, %v3242_v61  ;;  %v3712_v1 = vadd.f32 %v4278_v57, %v3711_v62 }
 0xc0e   :  { %v4854_v2 = vpop.f32.mrf.mxu1 }
 0xc0f   :  { %v3551_v4 = vmax.f32 %v3550_v63, 0.0 }
 0xc10   :  { %v3785_v5 = vpop.f32.mrf.mxu1 }
 0xc11   :  { %4848 = vmatmul.mubr.msk.f32.vlgmr.msra.gmra.mxu0 %vm200_vm2, %v3551_v4 }
 0xc12   :  { %4871 = vmatpush3.msra.mxu0 %v5681_v33  ;;  %v4859_v6 = vpop.f32.mrf.mxu1  ;;  %4872 = vmatprep.mubr.msk.f32.mxu0 %vm4902_vm0, %v4901_v0 }
 0xc13   :  { %4894 = vmatprep.subr.mxu0 %v4901_v0 }
 0xc14   :  { %v3857_v8 = vpop.f32.mrf.mxu1 }
 0xc15   :  { %v3858_v9 = vadd.f32 %v3857_v8, %v3785_v5  ;;  %4873 = vmatmul.mubr.msk.f32.vlgmr.msra.gmra.mxu0 %vm358_vm4, %v3935_v7 }
 0xc16   :  { %v4864_v10 = vpop.f32.mrf.mxu1  ;;  %4896 = vmatprep.mubr.msk.f32.mxu0 %vm4902_vm0, %v4901_v0  ;;  %4895 = vmatpush3.msra.mxu0 %v90_v23  ;;  %v4288_v0 = vld [vmem:[%s5848_s25] ss:$0 sm:$0xff] }
 0xc18   :  { %v3930_v11 = vpop.f32.mrf.mxu1 }
 0xc19   :  { %v3934_v13 = vadd.f32 %v3930_v11, %v3858_v9 }
 0xc1a   :  { %v4869_v14 = vpop.f32.mrf.mxu1 }
 0xcd1   :  { %v3627_v16 = vpop.f32.mrf.mxu0 }
 0xcd2   :  { %v3628_v24 = vadd.f32 %v4288_v0, %v3627_v16 }
 0xcd3   :  { %v4849_v17 = vpop.f32.mrf.mxu0 }
 0xcd4   :  { %v3631_v25 = vmax.f32 %v3628_v24, 0.0 }
 0xcd5   :  { %v4004_v18 = vpop.f32.mrf.mxu0 }
 0xcd6   :  { %v4008_v19 = vadd.f32 %v4004_v18, %v3934_v13  ;;  %v3633_v26 = vsel %vm3632_vm11, %v3631_v25, 0.0 }
 0xcd7   :  { %v4874_v50 = vpop.f32.mrf.mxu0  ;;  %v3634_v27 = vrot.slane %v3633_v26, 4 }
 0xcd8   :  { %v4012_v12 = vrot.slane %v4008_v19, %v5593_v20 }
 0xcd9   :  { %v3635_v28 = vadd.f32 %v3634_v27, %v3633_v26 }
 0xcda   :  { %v4013_v21 = vadd.f32 %v4012_v12, %v3712_v1 }
 0xcdb   :  { %v3636_v32 = vrot.slane %v3635_v28, 2 }
 0xcdc   :  { %v4014_v22 = vmax.f32 %v4013_v21, 0.0 }
 0xcdd   :  { %v3637_v36 = vadd.f32 %v3636_v32, %v3635_v28 }
 0xcde   :  { %4892 = vmatmul.mubr.msk.f32.vlgmr.msra.gmra.mxu1 %vm200_vm2, %v4014_v22 }
 0xcdf   :  { %v3638_v40 = vrot.slane %v3637_v36, 1 }
 0xce1   :  { %v3639_v42 = vadd.f32 %v3638_v40, %v3637_v36 }
 0xd9e   :  { %v4084_v20 = vpop.f32.mrf.mxu1 }
 0xd9f   :  { %v4085_v29 = vadd.f32 %v4288_v0, %v4084_v20 }
 0xda0   :  { %v4893_v30 = vpop.f32.mrf.mxu1 }
 0xda1   :  { %v4088_v31 = vmax.f32 %v4085_v29, 0.0 }
 0xda3   :  { %v4089_v33 = vsel %vm3632_vm11, %v4088_v31, 0.0 }
 0xda4   :  { %v4090_v34 = vrot.slane %v4089_v33, 4 }
 0xda6   :  { %v4091_v35 = vadd.f32 %v4090_v34, %v4089_v33 }
 0xda8   :  { %v4092_v38 = vrot.slane %v4091_v35, 2 }
 0xdaa   :  { %v4093_v41 = vadd.f32 %v4092_v38, %v4091_v35 }
 0xdac   :  { %v4094_v37 = vrot.slane %v4093_v41, 1 }
 0xdae   :  { %v4095_v43 = vadd.f32 %v4094_v37, %v4093_v41 }
 0xdb0   :  { %v4096_v44 = vsel %vm1133_vm5, %v3639_v42, %v4095_v43 }
 0xdb1   :  { %4897 = vmatmul.mubr.msk.f32.vlgmr.msra.gmra.mxu0 %vm358_vm4, %v4096_v44 }
 0xe71   :  { %v4166_v45 = vpop.f32.mrf.mxu0 }
 0xe72   :  { %v4170_v46 = vadd.f32 %v4166_v45, %v5757_v39 }
 0xe73   :  { %v4898_v47 = vpop.f32.mrf.mxu0 }
 0xe74   :  { %4172 = vst.msk [vmem:[%s5849_s19] sm:$0x3] %vm4171_vm12, %v4170_v46 }

</bundles_post_ra>
